<compile_context>
chip_gen: v7x
topology: tpu7x:2x2x1
jax: 0.10.0
libtpu: 0.0.40
codegen_flags: <defaults>
</compile_context>

<pallas_src>
import functools
import math

import jax
import jax.numpy as jnp
from jax import lax
from jax.experimental import pallas as pl
from jax.experimental.pallas import tpu as pltpu


_LN_EPS = 1e-5


# ----------------------------------------------------------------------------
# Fused block kernel (one grid step == one batch element)
# ----------------------------------------------------------------------------

def _layernorm(x, g, b):
    mean = jnp.mean(x, axis=-1, keepdims=True)
    var = jnp.mean((x - mean) ** 2, axis=-1, keepdims=True)
    return (x - mean) * lax.rsqrt(var + _LN_EPS) * g + b


def _gelu_exact(x):
    # torch.nn.GELU default (erf form)
    return 0.5 * x * (1.0 + lax.erf(x * jnp.float32(1.0 / math.sqrt(2.0))))


def _block_kernel(x_ref, ln1_g_ref, ln1_b_ref, wqkv_ref, fc_w_ref, fc_b_ref,
                  ln2_g_ref, ln2_b_ref, mlp_w1_ref, mlp_b1_ref, mlp_w2_ref,
                  mlp_b2_ref, o_ref, *, n_head):
    T, E = x_ref.shape
    hd = E // n_head
    cdt = wqkv_ref.dtype                       # matmul operand dtype (bf16)
    scale = jnp.float32(1.0 / math.sqrt(E))    # PyTorch ref: / embed_dim**0.5

    x = x_ref[...]                             # (T, E) f32, one batch element

    # ---- ln1 -> fused QKV projection (one MXU matmul, N = 3E) -------------
    h = _layernorm(x, ln1_g_ref[...], ln1_b_ref[...])
    qkv = jnp.dot(h.astype(cdt), wqkv_ref[...],
                  preferred_element_type=jnp.float32)        # (T, 3E) f32

    # ---- causal self-attention: per-batch (T, T) scores, plain mask -------
    row = lax.broadcasted_iota(jnp.int32, (T, T), 0)
    col = lax.broadcasted_iota(jnp.int32, (T, T), 1)
    causal = col <= row
    neg_inf = jnp.float32(-jnp.inf)

    # Output projection folded into the head loop (no concatenate):
    #   attn_proj += head_out_h @ fc_w[h*hd:(h+1)*hd, :]
    attn_proj = jnp.zeros((T, E), jnp.float32)
    for hidx in range(n_head):                 # unrolled at trace time
        lo = hidx * hd
        qh = qkv[:, lo:lo + hd].astype(cdt)
        kh = qkv[:, E + lo:E + lo + hd].astype(cdt)
        vh = qkv[:, 2 * E + lo:2 * E + lo + hd].astype(cdt)
        s = lax.dot_general(qh, kh, (((1,), (1,)), ((), ())),
                            preferred_element_type=jnp.float32) * scale
        s = jnp.where(causal, s, neg_inf)
        m = jnp.max(s, axis=-1, keepdims=True)
        e = jnp.exp(s - m)
        p = e / jnp.sum(e, axis=-1, keepdims=True)           # exact softmax
        head_out = jnp.dot(p.astype(cdt), vh,
                           preferred_element_type=jnp.float32)  # (T, hd)
        attn_proj += jnp.dot(head_out.astype(cdt), fc_w_ref[lo:lo + hd, :],
                             preferred_element_type=jnp.float32)
    x1 = x + attn_proj + fc_b_ref[...]                       # residual 1

    # ---- ln2 -> MLP (Linear -> GELU -> Linear) -----------------------------
    h2 = _layernorm(x1, ln2_g_ref[...], ln2_b_ref[...])
    m1 = jnp.dot(h2.astype(cdt), mlp_w1_ref[...],
                 preferred_element_type=jnp.float32) + mlp_b1_ref[...]
    m1 = _gelu_exact(m1)
    m2 = jnp.dot(m1.astype(cdt), mlp_w2_ref[...],
                 preferred_element_type=jnp.float32) + mlp_b2_ref[...]
    o_ref[...] = x1 + m2                                      # residual 2


# ----------------------------------------------------------------------------
# Wrapper
# ----------------------------------------------------------------------------

def prepare_params(params, compute_dtype=jnp.bfloat16):
    """One-time parameter prep: fuse QKV weights, cast matmul weights to bf16.

    LayerNorm params and biases stay f32 (VPU math stays f32)."""
    E = params["ln1_g"].shape[-1]
    f32 = jnp.float32
    wqkv = jnp.concatenate([params["wq"], params["wk"], params["wv"]], axis=1)
    return {
        "ln1_g": params["ln1_g"].reshape(1, E).astype(f32),
        "ln1_b": params["ln1_b"].reshape(1, E).astype(f32),
        "wqkv": wqkv.astype(compute_dtype),
        "fc_w": params["fc_w"].astype(compute_dtype),
        "fc_b": params["fc_b"].reshape(1, E).astype(f32),
        "ln2_g": params["ln2_g"].reshape(1, E).astype(f32),
        "ln2_b": params["ln2_b"].reshape(1, E).astype(f32),
        "mlp_w1": params["mlp_w1"].astype(compute_dtype),
        "mlp_b1": params["mlp_b1"].reshape(1, -1).astype(f32),
        "mlp_w2": params["mlp_w2"].astype(compute_dtype),
        "mlp_b2": params["mlp_b2"].reshape(1, E).astype(f32),
    }


def block_forward(prepped, x, *, n_head):
    """x: (B, T, E) f32 -> (B, T, E) f32.  One fused pallas_call, grid over B."""
    B, T, E = x.shape
    x2d = x.reshape(B * T, E)

    weight_names = ("ln1_g", "ln1_b", "wqkv", "fc_w", "fc_b",
                    "ln2_g", "ln2_b", "mlp_w1", "mlp_b1", "mlp_w2", "mlp_b2")
    weights = [prepped[n] for n in weight_names]

    in_specs = [pl.BlockSpec((T, E), lambda b: (b, 0))]        # x row tile
    # Constant index maps -> weights DMA'd once and stay resident in VMEM.
    in_specs += [pl.BlockSpec(w.shape, lambda b: (0, 0)) for w in weights]

    out = pl.pallas_call(
        functools.partial(_block_kernel, n_head=n_head),
        out_shape=jax.ShapeDtypeStruct((B * T, E), jnp.float32),
        grid=(B,),
        in_specs=in_specs,
        out_specs=pl.BlockSpec((T, E), lambda b: (b, 0)),
        compiler_params=pltpu.CompilerParams(
            dimension_semantics=("parallel",),
            vmem_limit_bytes=64 * 1024 * 1024),
    )(x2d, *weights)
    return out.reshape(B, T, E)


# ----------------------------------------------------------------------------
# Pure-JAX reference (matches the PyTorch module, f32 everywhere)
# ----------------------------------------------------------------------------

def block_ref(params, x, *, n_head):
    B, T, E = x.shape
    hd = E // n_head

    def ln(v, g, b):
        mu = jnp.mean(v, axis=-1, keepdims=True)
        var = jnp.mean((v - mu) ** 2, axis=-1, keepdims=True)
        return (v - mu) / jnp.sqrt(var + _LN_EPS) * g + b

    h = ln(x, params["ln1_g"], params["ln1_b"])
    q = (h @ params["wq"]).reshape(B, T, n_head, hd).transpose(0, 2, 1, 3)
    k = (h @ params["wk"]).reshape(B, T, n_head, hd).transpose(0, 2, 1, 3)
    v = (h @ params["wv"]).reshape(B, T, n_head, hd).transpose(0, 2, 1, 3)
    energy = q @ jnp.swapaxes(k, -1, -2)
    mask = jnp.tril(jnp.ones((T, T), bool))
    energy = jnp.where(mask, energy, -jnp.inf)
    attn = jax.nn.softmax(energy / jnp.sqrt(jnp.float32(E)), axis=-1)
    out = (attn @ v).transpose(0, 2, 1, 3).reshape(B, T, E)
    out = out @ params["fc_w"] + params["fc_b"]
    x1 = x + out
    h2 = ln(x1, params["ln2_g"], params["ln2_b"])
    m1 = jax.nn.gelu(h2 @ params["mlp_w1"] + params["mlp_b1"],
                     approximate=False)
    m2 = m1 @ params["mlp_w2"] + params["mlp_b2"]
    return x1 + m2


# ----------------------------------------------------------------------------
# Parameter init (deterministic) and driver
# ----------------------------------------------------------------------------

def init_params(key, embed_dim):
    E = embed_dim
    ks = jax.random.split(key, 6)

    def lin_w(k, fan_in, fan_out):
        return jax.random.normal(k, (fan_in, fan_out), jnp.float32) * 0.02

    return {
        "ln1_g": jnp.ones((E,), jnp.float32),
        "ln1_b": jnp.zeros((E,), jnp.float32),
        "wq": lin_w(ks[0], E, E),          # bias=False (per spec)
        "wk": lin_w(ks[1], E, E),
        "wv": lin_w(ks[2], E, E),
        "fc_w": lin_w(ks[3], E, E),
        "fc_b": jnp.zeros((E,), jnp.float32),
        "ln2_g": jnp.ones((E,), jnp.float32),
        "ln2_b": jnp.zeros((E,), jnp.float32),
        "mlp_w1": lin_w(ks[4], E, 4 * E),
        "mlp_b1": jnp.zeros((4 * E,), jnp.float32),
        "mlp_w2": lin_w(ks[5], 4 * E, E),
        "mlp_b2": jnp.zeros((E,), jnp.float32),
    }


if __name__ == "__main__":
    B, T, E, H = 2, 8, 128, 4           # batch, block_size, embed_dim, n_head

    key = jax.random.PRNGKey(0)
    k_params, k_x = jax.random.split(key)
    params = init_params(k_params, E)
    x = jax.random.normal(k_x, (B, T, E), jnp.float32)

    prepped = prepare_params(params)     # one-time weight prep (concat + bf16)
    y = block_forward(prepped, x, n_head=H)
    y = jax.block_until_ready(y)

    y_ref = block_ref(params, x, n_head=H)
    max_err = float(jnp.max(jnp.abs(y - y_ref)))

    assert y.shape == (B, T, E)
    assert bool(jnp.all(jnp.isfinite(y)))
    assert max_err < 0.1, f"max abs err vs reference: {max_err}"
    print("KERNEL_OK")
</pallas_src>

<mosaic_0001>
module attributes {stable_mosaic.version = 11 : i64} {
  func.func @_block_kernel(%arg0: i32, %arg1: memref<8x128xf32, #tpu.memory_space<vmem>>, %arg2: memref<1x128xf32, #tpu.memory_space<vmem>>, %arg3: memref<1x128xf32, #tpu.memory_space<vmem>>, %arg4: memref<128x384xbf16, #tpu.memory_space<vmem>>, %arg5: memref<128x128xbf16, #tpu.memory_space<vmem>>, %arg6: memref<1x128xf32, #tpu.memory_space<vmem>>, %arg7: memref<1x128xf32, #tpu.memory_space<vmem>>, %arg8: memref<1x128xf32, #tpu.memory_space<vmem>>, %arg9: memref<128x512xbf16, #tpu.memory_space<vmem>>, %arg10: memref<1x512xf32, #tpu.memory_space<vmem>>, %arg11: memref<512x128xbf16, #tpu.memory_space<vmem>>, %arg12: memref<1x128xf32, #tpu.memory_space<vmem>>, %arg13: memref<8x128xf32, #tpu.memory_space<vmem>>) attributes {dimension_semantics = [#tpu.dimension_semantics<parallel>], iteration_bounds = array<i64: 2>, scalar_prefetch = 0 : i64, scratch_operands = 0 : i64, tpu.core_type = #tpu.core_type<tc>, window_params = [{transform_indices = @transform_0, window_bounds = array<i64: 8, 128>}, {pipeline_mode = #tpu.pipeline_mode<synchronous>, transform_indices = @transform_1, window_bounds = array<i64: 1, 128>}, {pipeline_mode = #tpu.pipeline_mode<synchronous>, transform_indices = @transform_2, window_bounds = array<i64: 1, 128>}, {pipeline_mode = #tpu.pipeline_mode<synchronous>, transform_indices = @transform_3, window_bounds = array<i64: 128, 384>}, {pipeline_mode = #tpu.pipeline_mode<synchronous>, transform_indices = @transform_4, window_bounds = array<i64: 128, 128>}, {pipeline_mode = #tpu.pipeline_mode<synchronous>, transform_indices = @transform_5, window_bounds = array<i64: 1, 128>}, {pipeline_mode = #tpu.pipeline_mode<synchronous>, transform_indices = @transform_6, window_bounds = array<i64: 1, 128>}, {pipeline_mode = #tpu.pipeline_mode<synchronous>, transform_indices = @transform_7, window_bounds = array<i64: 1, 128>}, {pipeline_mode = #tpu.pipeline_mode<synchronous>, transform_indices = @transform_8, window_bounds = array<i64: 128, 512>}, {pipeline_mode = #tpu.pipeline_mode<synchronous>, transform_indices = @transform_9, window_bounds = array<i64: 1, 512>}, {pipeline_mode = #tpu.pipeline_mode<synchronous>, transform_indices = @transform_10, window_bounds = array<i64: 512, 128>}, {pipeline_mode = #tpu.pipeline_mode<synchronous>, transform_indices = @transform_11, window_bounds = array<i64: 1, 128>}, {transform_indices = @transform_12, window_bounds = array<i64: 8, 128>}]} {
    %c0 = arith.constant 0 : index
    %c0_0 = arith.constant 0 : index
    %0 = vector.load %arg1[%c0, %c0_0] : memref<8x128xf32, #tpu.memory_space<vmem>>, vector<8x128xf32>
    %c0_1 = arith.constant 0 : index
    %c0_2 = arith.constant 0 : index
    %1 = vector.load %arg2[%c0_1, %c0_2] : memref<1x128xf32, #tpu.memory_space<vmem>>, vector<1x128xf32>
    %c0_3 = arith.constant 0 : index
    %c0_4 = arith.constant 0 : index
    %2 = vector.load %arg3[%c0_3, %c0_4] : memref<1x128xf32, #tpu.memory_space<vmem>>, vector<1x128xf32>
    %cst = arith.constant dense<0.000000e+00> : vector<8xf32>
    %3 = vector.multi_reduction <add>, %0, %cst [1] : vector<8x128xf32> to vector<8xf32>
    %4 = vector.shape_cast %3 : vector<8xf32> to vector<8x1xf32>
    %cst_5 = arith.constant 1.280000e+02 : f32
    %5 = vector.broadcast %cst_5 : f32 to vector<8x1xf32>
    %6 = arith.divf %4, %5 : vector<8x1xf32>
    %7 = vector.broadcast %6 : vector<8x1xf32> to vector<8x128xf32>
    %8 = arith.subf %0, %7 : vector<8x128xf32>
    %9 = arith.mulf %8, %8 : vector<8x128xf32>
    %cst_6 = arith.constant dense<0.000000e+00> : vector<8xf32>
    %10 = vector.multi_reduction <add>, %9, %cst_6 [1] : vector<8x128xf32> to vector<8xf32>
    %11 = vector.shape_cast %10 : vector<8xf32> to vector<8x1xf32>
    %cst_7 = arith.constant 1.280000e+02 : f32
    %12 = vector.broadcast %cst_7 : f32 to vector<8x1xf32>
    %13 = arith.divf %11, %12 : vector<8x1xf32>
    %14 = vector.broadcast %6 : vector<8x1xf32> to vector<8x128xf32>
    %15 = arith.subf %0, %14 : vector<8x128xf32>
    %cst_8 = arith.constant 9.99999974E-6 : f32
    %16 = vector.broadcast %cst_8 : f32 to vector<8x1xf32>
    %17 = arith.addf %13, %16 : vector<8x1xf32>
    %18 = math.rsqrt %17 : vector<8x1xf32>
    %19 = vector.broadcast %18 : vector<8x1xf32> to vector<8x128xf32>
    %20 = arith.mulf %15, %19 : vector<8x128xf32>
    %21 = vector.broadcast %1 : vector<1x128xf32> to vector<8x128xf32>
    %22 = arith.mulf %20, %21 : vector<8x128xf32>
    %23 = vector.broadcast %2 : vector<1x128xf32> to vector<8x128xf32>
    %24 = arith.addf %22, %23 : vector<8x128xf32>
    %25 = arith.truncf %24 : vector<8x128xf32> to vector<8x128xbf16>
    %c0_9 = arith.constant 0 : index
    %c0_10 = arith.constant 0 : index
    %26 = vector.load %arg4[%c0_9, %c0_10] : memref<128x384xbf16, #tpu.memory_space<vmem>>, vector<128x384xbf16>
    %cst_11 = arith.constant dense<0.000000e+00> : vector<8x384xf32>
    %27 = tpu.matmul %25, %26, %cst_11 {dimension_numbers = #tpu.dot_dimension_numbers<[1], [0], [0], [1], [0, 0, 1, 1], [], []>} : vector<8x128xbf16>, vector<128x384xbf16>, vector<8x384xf32> -> vector<8x384xf32>
    %28 = tpu.iota {dimensions = array<i32: 0>} : vector<8x8xi32>
    %29 = tpu.iota {dimensions = array<i32: 1>} : vector<8x8xi32>
    %30 = arith.cmpi sle, %29, %28 : vector<8x8xi32>
    %cst_12 = arith.constant 0.000000e+00 : f32
    %31 = vector.broadcast %cst_12 : f32 to vector<8x128xf32>
    %32 = vector.extract_strided_slice %27 {offsets = [0, 0], sizes = [8, 32], strides = [1, 1]} : vector<8x384xf32> to vector<8x32xf32>
    %33 = arith.truncf %32 : vector<8x32xf32> to vector<8x32xbf16>
    %34 = vector.extract_strided_slice %27 {offsets = [0, 128], sizes = [8, 32], strides = [1, 1]} : vector<8x384xf32> to vector<8x32xf32>
    %35 = arith.truncf %34 : vector<8x32xf32> to vector<8x32xbf16>
    %36 = vector.extract_strided_slice %27 {offsets = [0, 256], sizes = [8, 32], strides = [1, 1]} : vector<8x384xf32> to vector<8x32xf32>
    %37 = arith.truncf %36 : vector<8x32xf32> to vector<8x32xbf16>
    %cst_13 = arith.constant dense<0.000000e+00> : vector<8x8xf32>
    %38 = tpu.matmul %33, %35, %cst_13 {dimension_numbers = #tpu.dot_dimension_numbers<[1], [1], [0], [0], [0, 0, 1, 0], [], []>} : vector<8x32xbf16>, vector<8x32xbf16>, vector<8x8xf32> -> vector<8x8xf32>
    %cst_14 = arith.constant 0.0883883461 : f32
    %39 = vector.broadcast %cst_14 : f32 to vector<8x8xf32>
    %40 = arith.mulf %38, %39 : vector<8x8xf32>
    %cst_15 = arith.constant 0xFF800000 : f32
    %41 = vector.broadcast %cst_15 : f32 to vector<8x8xf32>
    %42 = arith.select %30, %40, %41 : vector<8x8xi1>, vector<8x8xf32>
    %cst_16 = arith.constant dense<0xFF800000> : vector<8xf32>
    %43 = vector.multi_reduction <maximumf>, %42, %cst_16 [1] : vector<8x8xf32> to vector<8xf32>
    %44 = vector.shape_cast %43 : vector<8xf32> to vector<8x1xf32>
    %45 = vector.broadcast %44 : vector<8x1xf32> to vector<8x8xf32>
    %46 = arith.subf %42, %45 : vector<8x8xf32>
    %47 = math.exp %46 : vector<8x8xf32>
    %cst_17 = arith.constant dense<0.000000e+00> : vector<8xf32>
    %48 = vector.multi_reduction <add>, %47, %cst_17 [1] : vector<8x8xf32> to vector<8xf32>
    %49 = vector.shape_cast %48 : vector<8xf32> to vector<8x1xf32>
    %50 = vector.broadcast %49 : vector<8x1xf32> to vector<8x8xf32>
    %51 = arith.divf %47, %50 : vector<8x8xf32>
    %52 = arith.truncf %51 : vector<8x8xf32> to vector<8x8xbf16>
    %cst_18 = arith.constant dense<0.000000e+00> : vector<8x32xf32>
    %53 = tpu.matmul %52, %37, %cst_18 {dimension_numbers = #tpu.dot_dimension_numbers<[1], [0], [0], [1], [0, 0, 1, 1], [], []>} : vector<8x8xbf16>, vector<8x32xbf16>, vector<8x32xf32> -> vector<8x32xf32>
    %54 = arith.truncf %53 : vector<8x32xf32> to vector<8x32xbf16>
    %c0_19 = arith.constant 0 : index
    %c0_20 = arith.constant 0 : index
    %55 = vector.load %arg5[%c0_19, %c0_20] : memref<128x128xbf16, #tpu.memory_space<vmem>>, vector<32x128xbf16>
    %cst_21 = arith.constant dense<0.000000e+00> : vector<8x128xf32>
    %56 = tpu.matmul %54, %55, %cst_21 {dimension_numbers = #tpu.dot_dimension_numbers<[1], [0], [0], [1], [0, 0, 1, 1], [], []>} : vector<8x32xbf16>, vector<32x128xbf16>, vector<8x128xf32> -> vector<8x128xf32>
    %57 = arith.addf %31, %56 : vector<8x128xf32>
    %58 = vector.extract_strided_slice %27 {offsets = [0, 32], sizes = [8, 32], strides = [1, 1]} : vector<8x384xf32> to vector<8x32xf32>
    %59 = arith.truncf %58 : vector<8x32xf32> to vector<8x32xbf16>
    %60 = vector.extract_strided_slice %27 {offsets = [0, 160], sizes = [8, 32], strides = [1, 1]} : vector<8x384xf32> to vector<8x32xf32>
    %61 = arith.truncf %60 : vector<8x32xf32> to vector<8x32xbf16>
    %62 = vector.extract_strided_slice %27 {offsets = [0, 288], sizes = [8, 32], strides = [1, 1]} : vector<8x384xf32> to vector<8x32xf32>
    %63 = arith.truncf %62 : vector<8x32xf32> to vector<8x32xbf16>
    %cst_22 = arith.constant dense<0.000000e+00> : vector<8x8xf32>
    %64 = tpu.matmul %59, %61, %cst_22 {dimension_numbers = #tpu.dot_dimension_numbers<[1], [1], [0], [0], [0, 0, 1, 0], [], []>} : vector<8x32xbf16>, vector<8x32xbf16>, vector<8x8xf32> -> vector<8x8xf32>
    %cst_23 = arith.constant 0.0883883461 : f32
    %65 = vector.broadcast %cst_23 : f32 to vector<8x8xf32>
    %66 = arith.mulf %64, %65 : vector<8x8xf32>
    %cst_24 = arith.constant 0xFF800000 : f32
    %67 = vector.broadcast %cst_24 : f32 to vector<8x8xf32>
    %68 = arith.select %30, %66, %67 : vector<8x8xi1>, vector<8x8xf32>
    %cst_25 = arith.constant dense<0xFF800000> : vector<8xf32>
    %69 = vector.multi_reduction <maximumf>, %68, %cst_25 [1] : vector<8x8xf32> to vector<8xf32>
    %70 = vector.shape_cast %69 : vector<8xf32> to vector<8x1xf32>
    %71 = vector.broadcast %70 : vector<8x1xf32> to vector<8x8xf32>
    %72 = arith.subf %68, %71 : vector<8x8xf32>
    %73 = math.exp %72 : vector<8x8xf32>
    %cst_26 = arith.constant dense<0.000000e+00> : vector<8xf32>
    %74 = vector.multi_reduction <add>, %73, %cst_26 [1] : vector<8x8xf32> to vector<8xf32>
    %75 = vector.shape_cast %74 : vector<8xf32> to vector<8x1xf32>
    %76 = vector.broadcast %75 : vector<8x1xf32> to vector<8x8xf32>
    %77 = arith.divf %73, %76 : vector<8x8xf32>
    %78 = arith.truncf %77 : vector<8x8xf32> to vector<8x8xbf16>
    %cst_27 = arith.constant dense<0.000000e+00> : vector<8x32xf32>
    %79 = tpu.matmul %78, %63, %cst_27 {dimension_numbers = #tpu.dot_dimension_numbers<[1], [0], [0], [1], [0, 0, 1, 1], [], []>} : vector<8x8xbf16>, vector<8x32xbf16>, vector<8x32xf32> -> vector<8x32xf32>
    %80 = arith.truncf %79 : vector<8x32xf32> to vector<8x32xbf16>
    %c32 = arith.constant 32 : index
    %c0_28 = arith.constant 0 : index
    %81 = vector.load %arg5[%c32, %c0_28] : memref<128x128xbf16, #tpu.memory_space<vmem>>, vector<32x128xbf16>
    %cst_29 = arith.constant dense<0.000000e+00> : vector<8x128xf32>
    %82 = tpu.matmul %80, %81, %cst_29 {dimension_numbers = #tpu.dot_dimension_numbers<[1], [0], [0], [1], [0, 0, 1, 1], [], []>} : vector<8x32xbf16>, vector<32x128xbf16>, vector<8x128xf32> -> vector<8x128xf32>
    %83 = arith.addf %57, %82 : vector<8x128xf32>
    %84 = vector.extract_strided_slice %27 {offsets = [0, 64], sizes = [8, 32], strides = [1, 1]} : vector<8x384xf32> to vector<8x32xf32>
    %85 = arith.truncf %84 : vector<8x32xf32> to vector<8x32xbf16>
    %86 = vector.extract_strided_slice %27 {offsets = [0, 192], sizes = [8, 32], strides = [1, 1]} : vector<8x384xf32> to vector<8x32xf32>
    %87 = arith.truncf %86 : vector<8x32xf32> to vector<8x32xbf16>
    %88 = vector.extract_strided_slice %27 {offsets = [0, 320], sizes = [8, 32], strides = [1, 1]} : vector<8x384xf32> to vector<8x32xf32>
    %89 = arith.truncf %88 : vector<8x32xf32> to vector<8x32xbf16>
    %cst_30 = arith.constant dense<0.000000e+00> : vector<8x8xf32>
    %90 = tpu.matmul %85, %87, %cst_30 {dimension_numbers = #tpu.dot_dimension_numbers<[1], [1], [0], [0], [0, 0, 1, 0], [], []>} : vector<8x32xbf16>, vector<8x32xbf16>, vector<8x8xf32> -> vector<8x8xf32>
    %cst_31 = arith.constant 0.0883883461 : f32
    %91 = vector.broadcast %cst_31 : f32 to vector<8x8xf32>
    %92 = arith.mulf %90, %91 : vector<8x8xf32>
    %cst_32 = arith.constant 0xFF800000 : f32
    %93 = vector.broadcast %cst_32 : f32 to vector<8x8xf32>
    %94 = arith.select %30, %92, %93 : vector<8x8xi1>, vector<8x8xf32>
    %cst_33 = arith.constant dense<0xFF800000> : vector<8xf32>
    %95 = vector.multi_reduction <maximumf>, %94, %cst_33 [1] : vector<8x8xf32> to vector<8xf32>
    %96 = vector.shape_cast %95 : vector<8xf32> to vector<8x1xf32>
    %97 = vector.broadcast %96 : vector<8x1xf32> to vector<8x8xf32>
    %98 = arith.subf %94, %97 : vector<8x8xf32>
    %99 = math.exp %98 : vector<8x8xf32>
    %cst_34 = arith.constant dense<0.000000e+00> : vector<8xf32>
    %100 = vector.multi_reduction <add>, %99, %cst_34 [1] : vector<8x8xf32> to vector<8xf32>
    %101 = vector.shape_cast %100 : vector<8xf32> to vector<8x1xf32>
    %102 = vector.broadcast %101 : vector<8x1xf32> to vector<8x8xf32>
    %103 = arith.divf %99, %102 : vector<8x8xf32>
    %104 = arith.truncf %103 : vector<8x8xf32> to vector<8x8xbf16>
    %cst_35 = arith.constant dense<0.000000e+00> : vector<8x32xf32>
    %105 = tpu.matmul %104, %89, %cst_35 {dimension_numbers = #tpu.dot_dimension_numbers<[1], [0], [0], [1], [0, 0, 1, 1], [], []>} : vector<8x8xbf16>, vector<8x32xbf16>, vector<8x32xf32> -> vector<8x32xf32>
    %106 = arith.truncf %105 : vector<8x32xf32> to vector<8x32xbf16>
    %c64 = arith.constant 64 : index
    %c0_36 = arith.constant 0 : index
    %107 = vector.load %arg5[%c64, %c0_36] : memref<128x128xbf16, #tpu.memory_space<vmem>>, vector<32x128xbf16>
    %cst_37 = arith.constant dense<0.000000e+00> : vector<8x128xf32>
    %108 = tpu.matmul %106, %107, %cst_37 {dimension_numbers = #tpu.dot_dimension_numbers<[1], [0], [0], [1], [0, 0, 1, 1], [], []>} : vector<8x32xbf16>, vector<32x128xbf16>, vector<8x128xf32> -> vector<8x128xf32>
    %109 = arith.addf %83, %108 : vector<8x128xf32>
    %110 = vector.extract_strided_slice %27 {offsets = [0, 96], sizes = [8, 32], strides = [1, 1]} : vector<8x384xf32> to vector<8x32xf32>
    %111 = arith.truncf %110 : vector<8x32xf32> to vector<8x32xbf16>
    %112 = vector.extract_strided_slice %27 {offsets = [0, 224], sizes = [8, 32], strides = [1, 1]} : vector<8x384xf32> to vector<8x32xf32>
    %113 = arith.truncf %112 : vector<8x32xf32> to vector<8x32xbf16>
    %114 = vector.extract_strided_slice %27 {offsets = [0, 352], sizes = [8, 32], strides = [1, 1]} : vector<8x384xf32> to vector<8x32xf32>
    %115 = arith.truncf %114 : vector<8x32xf32> to vector<8x32xbf16>
    %cst_38 = arith.constant dense<0.000000e+00> : vector<8x8xf32>
    %116 = tpu.matmul %111, %113, %cst_38 {dimension_numbers = #tpu.dot_dimension_numbers<[1], [1], [0], [0], [0, 0, 1, 0], [], []>} : vector<8x32xbf16>, vector<8x32xbf16>, vector<8x8xf32> -> vector<8x8xf32>
    %cst_39 = arith.constant 0.0883883461 : f32
    %117 = vector.broadcast %cst_39 : f32 to vector<8x8xf32>
    %118 = arith.mulf %116, %117 : vector<8x8xf32>
    %cst_40 = arith.constant 0xFF800000 : f32
    %119 = vector.broadcast %cst_40 : f32 to vector<8x8xf32>
    %120 = arith.select %30, %118, %119 : vector<8x8xi1>, vector<8x8xf32>
    %cst_41 = arith.constant dense<0xFF800000> : vector<8xf32>
    %121 = vector.multi_reduction <maximumf>, %120, %cst_41 [1] : vector<8x8xf32> to vector<8xf32>
    %122 = vector.shape_cast %121 : vector<8xf32> to vector<8x1xf32>
    %123 = vector.broadcast %122 : vector<8x1xf32> to vector<8x8xf32>
    %124 = arith.subf %120, %123 : vector<8x8xf32>
    %125 = math.exp %124 : vector<8x8xf32>
    %cst_42 = arith.constant dense<0.000000e+00> : vector<8xf32>
    %126 = vector.multi_reduction <add>, %125, %cst_42 [1] : vector<8x8xf32> to vector<8xf32>
    %127 = vector.shape_cast %126 : vector<8xf32> to vector<8x1xf32>
    %128 = vector.broadcast %127 : vector<8x1xf32> to vector<8x8xf32>
    %129 = arith.divf %125, %128 : vector<8x8xf32>
    %130 = arith.truncf %129 : vector<8x8xf32> to vector<8x8xbf16>
    %cst_43 = arith.constant dense<0.000000e+00> : vector<8x32xf32>
    %131 = tpu.matmul %130, %115, %cst_43 {dimension_numbers = #tpu.dot_dimension_numbers<[1], [0], [0], [1], [0, 0, 1, 1], [], []>} : vector<8x8xbf16>, vector<8x32xbf16>, vector<8x32xf32> -> vector<8x32xf32>
    %132 = arith.truncf %131 : vector<8x32xf32> to vector<8x32xbf16>
    %c96 = arith.constant 96 : index
    %c0_44 = arith.constant 0 : index
    %133 = vector.load %arg5[%c96, %c0_44] : memref<128x128xbf16, #tpu.memory_space<vmem>>, vector<32x128xbf16>
    %cst_45 = arith.constant dense<0.000000e+00> : vector<8x128xf32>
    %134 = tpu.matmul %132, %133, %cst_45 {dimension_numbers = #tpu.dot_dimension_numbers<[1], [0], [0], [1], [0, 0, 1, 1], [], []>} : vector<8x32xbf16>, vector<32x128xbf16>, vector<8x128xf32> -> vector<8x128xf32>
    %135 = arith.addf %109, %134 : vector<8x128xf32>
    %136 = arith.addf %0, %135 : vector<8x128xf32>
    %c0_46 = arith.constant 0 : index
    %c0_47 = arith.constant 0 : index
    %137 = vector.load %arg6[%c0_46, %c0_47] : memref<1x128xf32, #tpu.memory_space<vmem>>, vector<1x128xf32>
    %138 = vector.broadcast %137 : vector<1x128xf32> to vector<8x128xf32>
    %139 = arith.addf %136, %138 : vector<8x128xf32>
    %c0_48 = arith.constant 0 : index
    %c0_49 = arith.constant 0 : index
    %140 = vector.load %arg7[%c0_48, %c0_49] : memref<1x128xf32, #tpu.memory_space<vmem>>, vector<1x128xf32>
    %c0_50 = arith.constant 0 : index
    %c0_51 = arith.constant 0 : index
    %141 = vector.load %arg8[%c0_50, %c0_51] : memref<1x128xf32, #tpu.memory_space<vmem>>, vector<1x128xf32>
    %cst_52 = arith.constant dense<0.000000e+00> : vector<8xf32>
    %142 = vector.multi_reduction <add>, %139, %cst_52 [1] : vector<8x128xf32> to vector<8xf32>
    %143 = vector.shape_cast %142 : vector<8xf32> to vector<8x1xf32>
    %cst_53 = arith.constant 1.280000e+02 : f32
    %144 = vector.broadcast %cst_53 : f32 to vector<8x1xf32>
    %145 = arith.divf %143, %144 : vector<8x1xf32>
    %146 = vector.broadcast %145 : vector<8x1xf32> to vector<8x128xf32>
    %147 = arith.subf %139, %146 : vector<8x128xf32>
    %148 = arith.mulf %147, %147 : vector<8x128xf32>
    %cst_54 = arith.constant dense<0.000000e+00> : vector<8xf32>
    %149 = vector.multi_reduction <add>, %148, %cst_54 [1] : vector<8x128xf32> to vector<8xf32>
    %150 = vector.shape_cast %149 : vector<8xf32> to vector<8x1xf32>
    %cst_55 = arith.constant 1.280000e+02 : f32
    %151 = vector.broadcast %cst_55 : f32 to vector<8x1xf32>
    %152 = arith.divf %150, %151 : vector<8x1xf32>
    %153 = vector.broadcast %145 : vector<8x1xf32> to vector<8x128xf32>
    %154 = arith.subf %139, %153 : vector<8x128xf32>
    %cst_56 = arith.constant 9.99999974E-6 : f32
    %155 = vector.broadcast %cst_56 : f32 to vector<8x1xf32>
    %156 = arith.addf %152, %155 : vector<8x1xf32>
    %157 = math.rsqrt %156 : vector<8x1xf32>
    %158 = vector.broadcast %157 : vector<8x1xf32> to vector<8x128xf32>
    %159 = arith.mulf %154, %158 : vector<8x128xf32>
    %160 = vector.broadcast %140 : vector<1x128xf32> to vector<8x128xf32>
    %161 = arith.mulf %159, %160 : vector<8x128xf32>
    %162 = vector.broadcast %141 : vector<1x128xf32> to vector<8x128xf32>
    %163 = arith.addf %161, %162 : vector<8x128xf32>
    %164 = arith.truncf %163 : vector<8x128xf32> to vector<8x128xbf16>
    %c0_57 = arith.constant 0 : index
    %c0_58 = arith.constant 0 : index
    %165 = vector.load %arg9[%c0_57, %c0_58] : memref<128x512xbf16, #tpu.memory_space<vmem>>, vector<128x512xbf16>
    %cst_59 = arith.constant dense<0.000000e+00> : vector<8x512xf32>
    %166 = tpu.matmul %164, %165, %cst_59 {dimension_numbers = #tpu.dot_dimension_numbers<[1], [0], [0], [1], [0, 0, 1, 1], [], []>} : vector<8x128xbf16>, vector<128x512xbf16>, vector<8x512xf32> -> vector<8x512xf32>
    %c0_60 = arith.constant 0 : index
    %c0_61 = arith.constant 0 : index
    %167 = vector.load %arg10[%c0_60, %c0_61] : memref<1x512xf32, #tpu.memory_space<vmem>>, vector<1x512xf32>
    %168 = vector.broadcast %167 : vector<1x512xf32> to vector<8x512xf32>
    %169 = arith.addf %166, %168 : vector<8x512xf32>
    %cst_62 = arith.constant 5.000000e-01 : f32
    %170 = vector.broadcast %cst_62 : f32 to vector<8x512xf32>
    %171 = arith.mulf %170, %169 : vector<8x512xf32>
    %cst_63 = arith.constant 0.707106769 : f32
    %172 = vector.broadcast %cst_63 : f32 to vector<8x512xf32>
    %173 = arith.mulf %169, %172 : vector<8x512xf32>
    %174 = math.erf %173 : vector<8x512xf32>
    %cst_64 = arith.constant 1.000000e+00 : f32
    %175 = vector.broadcast %cst_64 : f32 to vector<8x512xf32>
    %176 = arith.addf %175, %174 : vector<8x512xf32>
    %177 = arith.mulf %171, %176 : vector<8x512xf32>
    %178 = arith.truncf %177 : vector<8x512xf32> to vector<8x512xbf16>
    %c0_65 = arith.constant 0 : index
    %c0_66 = arith.constant 0 : index
    %179 = vector.load %arg11[%c0_65, %c0_66] : memref<512x128xbf16, #tpu.memory_space<vmem>>, vector<512x128xbf16>
    %cst_67 = arith.constant dense<0.000000e+00> : vector<8x128xf32>
    %180 = tpu.matmul %178, %179, %cst_67 {dimension_numbers = #tpu.dot_dimension_numbers<[1], [0], [0], [1], [0, 0, 1, 1], [], []>} : vector<8x512xbf16>, vector<512x128xbf16>, vector<8x128xf32> -> vector<8x128xf32>
    %c0_68 = arith.constant 0 : index
    %c0_69 = arith.constant 0 : index
    %181 = vector.load %arg12[%c0_68, %c0_69] : memref<1x128xf32, #tpu.memory_space<vmem>>, vector<1x128xf32>
    %182 = vector.broadcast %181 : vector<1x128xf32> to vector<8x128xf32>
    %183 = arith.addf %180, %182 : vector<8x128xf32>
    %184 = arith.addf %139, %183 : vector<8x128xf32>
    %c0_70 = arith.constant 0 : index
    %c0_71 = arith.constant 0 : index
    %185 = vector.load %arg13[%c0_70, %c0_71] : memref<8x128xf32, #tpu.memory_space<vmem>>, vector<8x128xf32>
    tpu.vector_store %arg13[%c0_70, %c0_71], %184 {strides = array<i32>} : memref<8x128xf32, #tpu.memory_space<vmem>>, vector<8x128xf32>,
    return
  }
  func.func @transform_0(%arg0: i32) -> (i32, i32) {
    %c0_i32 = arith.constant 0 : i32
    %c0_i32_0 = arith.constant 0 : i32
    return %arg0, %c0_i32 : i32, i32
  }
  func.func @transform_1(%arg0: i32) -> (i32, i32) {
    %c0_i32 = arith.constant 0 : i32
    %c0_i32_0 = arith.constant 0 : i32
    %c0_i32_1 = arith.constant 0 : i32
    return %c0_i32, %c0_i32_0 : i32, i32
  }
  func.func @transform_2(%arg0: i32) -> (i32, i32) {
    %c0_i32 = arith.constant 0 : i32
    %c0_i32_0 = arith.constant 0 : i32
    %c0_i32_1 = arith.constant 0 : i32
    return %c0_i32, %c0_i32_0 : i32, i32
  }
  func.func @transform_3(%arg0: i32) -> (i32, i32) {
    %c0_i32 = arith.constant 0 : i32
    %c0_i32_0 = arith.constant 0 : i32
    %c0_i32_1 = arith.constant 0 : i32
    return %c0_i32, %c0_i32_0 : i32, i32
  }
  func.func @transform_4(%arg0: i32) -> (i32, i32) {
    %c0_i32 = arith.constant 0 : i32
    %c0_i32_0 = arith.constant 0 : i32
    %c0_i32_1 = arith.constant 0 : i32
    return %c0_i32, %c0_i32_0 : i32, i32
  }
  func.func @transform_5(%arg0: i32) -> (i32, i32) {
    %c0_i32 = arith.constant 0 : i32
    %c0_i32_0 = arith.constant 0 : i32
    %c0_i32_1 = arith.constant 0 : i32
    return %c0_i32, %c0_i32_0 : i32, i32
  }
  func.func @transform_6(%arg0: i32) -> (i32, i32) {
    %c0_i32 = arith.constant 0 : i32
    %c0_i32_0 = arith.constant 0 : i32
    %c0_i32_1 = arith.constant 0 : i32
    return %c0_i32, %c0_i32_0 : i32, i32
  }
  func.func @transform_7(%arg0: i32) -> (i32, i32) {
    %c0_i32 = arith.constant 0 : i32
    %c0_i32_0 = arith.constant 0 : i32
    %c0_i32_1 = arith.constant 0 : i32
    return %c0_i32, %c0_i32_0 : i32, i32
  }
  func.func @transform_8(%arg0: i32) -> (i32, i32) {
    %c0_i32 = arith.constant 0 : i32
    %c0_i32_0 = arith.constant 0 : i32
    %c0_i32_1 = arith.constant 0 : i32
    return %c0_i32, %c0_i32_0 : i32, i32
  }
  func.func @transform_9(%arg0: i32) -> (i32, i32) {
    %c0_i32 = arith.constant 0 : i32
    %c0_i32_0 = arith.constant 0 : i32
    %c0_i32_1 = arith.constant 0 : i32
    return %c0_i32, %c0_i32_0 : i32, i32
  }
  func.func @transform_10(%arg0: i32) -> (i32, i32) {
    %c0_i32 = arith.constant 0 : i32
    %c0_i32_0 = arith.constant 0 : i32
    %c0_i32_1 = arith.constant 0 : i32
    return %c0_i32, %c0_i32_0 : i32, i32
  }
  func.func @transform_11(%arg0: i32) -> (i32, i32) {
    %c0_i32 = arith.constant 0 : i32
    %c0_i32_0 = arith.constant 0 : i32
    %c0_i32_1 = arith.constant 0 : i32
    return %c0_i32, %c0_i32_0 : i32, i32
  }
  func.func @transform_12(%arg0: i32) -> (i32, i32) {
    %c0_i32 = arith.constant 0 : i32
    %c0_i32_0 = arith.constant 0 : i32
    return %arg0, %c0_i32 : i32, i32
  }
}

</mosaic_0001>

<bundles_post_ra>
// kernel: tpu_custom_call.1
= control target key start
LH: loop header
LB: loop body
LE: loop exit
PB: predicated region body
PF: predicated region fallthrough
CT: control target
= control target key end

     0   :  { %s4173_s0 = inlined_call_operand.hbm [shape: f32[16,128], index: 0, kind: input, shape index: {}]   ;;  %s4174_s1 = inlined_call_operand.hbm [shape: f32[1,128], index: 1, kind: input, shape index: {}]   ;;  %s4175_s2 = inlined_call_operand.hbm [shape: f32[1,128], index: 2, kind: input, shape index: {}]   ;;  %s4176_s3 = inlined_call_operand.hbm [shape: bf16[128,384], index: 3, kind: input, shape index: {}]   ;;  %s4177_s4 = inlined_call_operand.hbm [shape: bf16[128,128], index: 4, kind: input, shape index: {}]   ;;  %s4178_s5 = inlined_call_operand.hbm [shape: f32[1,128], index: 5, kind: input, shape index: {}]   ;;  %s4179_s6 = inlined_call_operand.hbm [shape: f32[1,128], index: 6, kind: input, shape index: {}]   ;;  %s4180_s7 = inlined_call_operand.hbm [shape: f32[1,128], index: 7, kind: input, shape index: {}]   ;;  %s4181_s8 = inlined_call_operand.hbm [shape: bf16[128,512], index: 8, kind: input, shape index: {}]   ;;  %s4182_s9 = inlined_call_operand.hbm [shape: f32[1,512], index: 9, kind: input, shape index: {}]   ;;  %s4183_s10 = inlined_call_operand.hbm [shape: bf16[512,128], index: 10, kind: input, shape index: {}]   ;;  %s4184_s11 = inlined_call_operand.hbm [shape: f32[1,128], index: 11, kind: input, shape index: {}]   ;;  %s4185_s12 = inlined_call_operand.hbm [shape: f32[16,128], index: 12, kind: output, shape index: {}]  }
   0x1   :  { %4193 = sst [smem:[#allocation32_spill]] %s4174_s1 }
   0x2   :  { %4194 = sst [smem:[#allocation33_spill]] %s4175_s2 }
   0x3   :  { %4195 = sst [smem:[#allocation34_spill]] %s4176_s3 }
   0x4   :  { %4196 = sst [smem:[#allocation35_spill]] %s4178_s5 }
   0x5   :  { %4197 = sst [smem:[#allocation36_spill]] %s4185_s12 }
   0x6   :  { %17 = vsyncpa [#allocation3], 0 }
   0x7   :  { %19 = vsyncpa [#allocation3 + $0x1], 0 }
   0x8   :  { %20 = vsyncpa [#allocation6], 0 }
   0x9   :  { %21 = vsyncpa [#allocation9], 0 }
   0xa   :  { %22 = vsyncpa [#allocation12], 0 }
   0xb   :  { %23 = vsyncpa [#allocation15], 0 }
   0xc   :  { %24 = vsyncpa [#allocation18], 0 }
   0xd   :  { %25 = vsyncpa [#allocation21], 0 }
   0xe   :  { %26 = vsyncpa [#allocation4], 0 }
   0xf   :  { %28 = vsyncpa [#allocation4 + $0x1], 0  ;;  %s3602_s21 = smov 0   ;;  %s3604_s22 = smov 0  }
  0x10   :  { %s3606_s23 = smov 0   ;;  %s3608_s24 = smov 0  }
  0x11 LB: > { %s3512_s25 = smov [#allocation5]   ;;  %s3623_s27 = sadd.s32 4294967295, %s3510_s24   ;;  %s3510_s24 = sphi %s3608_s24, %s4234_s24   ;;  %s3506_s23 = sphi %s3606_s23, %s4233_s23   ;;  %s3502_s22 = sphi %s3604_s22, %s4232_s22   ;;  %s3498_s21 = sphi %s3602_s21, %s4231_s21  }
  0x12   : > { %s335_s26 = sshll.u32 %s3512_s25, 4  ;;  %p2437_p0 = scmp.ge.s32.totalorder %s3510_s24, 1  ;;  %s3628_s26 = int_to_ptr.vmem [resolvable:$true] %s335_s26 }
  0x13   : > { %p4188_p1 = scmp.eq.s32.totalorder %s3623_s27, 0  ;;  %p322_p2 = scmp.lt.s32.totalorder %s3510_s24, 3 }
  0x14   : > { %s3513_s29 = smov [#allocation8]   ;;  %s3514_s14 = smov [#allocation11]  }
  0x15   : > { %p3630_p3 = pnand %p2437_p0, %p322_p2  ;;  %s356_s30 = sshll.u32 %s3513_s29, 4  ;;  %s3637_s30 = int_to_ptr.vmem [resolvable:$true] %s356_s30 }
  0x16   : > { %s383_s15 = sshll.u32 %s3514_s14, 4  ;;  %s4201_s1 = sld [smem:[#allocation32_spill]]  ;;  %s3645_s15 = int_to_ptr.vmem [resolvable:$true] %s383_s15 }
  0x17   : > { %s4198_s28 = scalar_select %p3630_p3, 1, 0 }
  0x18   : > { %p2813_p5 = pneg %p3630_p3 }
  0x19   : > { %4199 = sst [smem:[#allocation31_spill]] %s4198_s28 }
  0x1a   : > { %p3641_p6 = pnand %p2813_p5, %p4188_p1 }
  0x1c   : > { %s3082_s18 = scalar_lea.hbm %s4201_s1, 16  ;;  %p3655_p8 = pneg %p3641_p6 }
  0x1d   : > { %p3083_p7 = scmp.ne.s32.totalorder %s4201_s1, %s3082_s18  ;;  %p3089_p11 = scmp.lt.u32.totalorder %s3082_s18, %s4201_s1 }
  0x1f   : > { %p3085_p9 = pnand %p3655_p8, %p3083_p7 }
  0x21   : > { %p3086_p10 = pneg %p3085_p9 }
  0x23   : > { %p3091_p12 = pnand %p3089_p11, %p3086_p10 }
  0x25   : > { %3094 = shalt.err (!%p3091_p12)
}
  0x26   : > { %s3095_s16 = scalar_lea.vmem %s3628_s26, 16  ;;  %s3102_s17 = scalar_lea.vmem %s3628_s26, 32 }
  0x27   : > { %p3096_p13 = scmp.ne.s32.totalorder %s3628_s26, %s3095_s16  ;;  %p3103_p5 = scmp.lt.s32.totalorder %s3628_s26, %s3628_s26 }
  0x28   : > { %p3104_p7 = scmp.lt.s32.totalorder %s3102_s17, %s3095_s16 }
  0x29   : > { %p3098_p0 = pnand %p3096_p13, %p3655_p8 }
  0x2a   : > { %p3105_p9 = por %p3104_p7, %p3103_p5 }
  0x2b   : > { %p3099_p2 = pneg %p3098_p0 }
  0x2d   : > { %p3106_p4 = pnand %p3105_p9, %p3099_p2 }
  0x2f   : > { %3109 = shalt.err (!%p3106_p4)
}
  0x30   : > { %2816 = dma.hbm_to_vmem [thread:$0]  (!%p3641_p6), %s4201_s1, 16, %s3628_s26, [#allocation6]  }
  0x31   : > { %s4203_s3 = sld [smem:[#allocation34_spill]] }
  0x37   : > { %s3110_s14 = scalar_lea.hbm %s4203_s3, 3072 }
  0x38   : > { %p3111_p10 = scmp.ne.s32.totalorder %s4203_s3, %s3110_s14  ;;  %p3117_p4 = scmp.lt.u32.totalorder %s3110_s14, %s4203_s3 }
  0x3a   : > { %p3113_p11 = pnand %p3111_p10, %p3655_p8 }
  0x3c   : > { %p3114_p12 = pneg %p3113_p11 }
  0x3e   : > { %p3119_p13 = pnand %p3117_p4, %p3114_p12 }
  0x40   : > { %3122 = shalt.err (!%p3119_p13)
}
  0x41   : > { %s3123_s26 = scalar_lea.vmem %s3637_s30, 3072  ;;  %p3131_p7 = scmp.lt.s32.totalorder %s3637_s30, %s3637_s30 }
  0x42   : > { %p3124_p0 = scmp.ne.s32.totalorder %s3637_s30, %s3123_s26  ;;  %p3132_p9 = scmp.lt.s32.totalorder %s3123_s26, %s3123_s26 }
  0x44   : > { %p3126_p2 = pnand %p3124_p0, %p3655_p8  ;;  %p3133_p10 = por %p3132_p9, %p3131_p7 }
  0x46   : > { %p3127_p5 = pneg %p3126_p2 }
  0x48   : > { %p3134_p11 = pnand %p3133_p10, %p3127_p5 }
  0x4a   : > { %3137 = shalt.err (!%p3134_p11)
}
  0x4b   : > { %s3515_s12 = smov 192   ;;  %s3516_s28 = smov 12  }
  0x4c   : > { %2822 = dma.hbm_to_vmem [thread:$0]  (!%p3641_p6), %s4203_s3, 3072, %s3637_s30, [#allocation9], %s3515_s12, %s3515_s12, %s3516_s28  }
  0x4d   : > { %s4204_s5 = sld [smem:[#allocation35_spill]] }
  0x53   : > { %s3138_s14 = scalar_lea.hbm %s4204_s5, 16 }
  0x54   : > { %p3139_p12 = scmp.ne.s32.totalorder %s4204_s5, %s3138_s14  ;;  %p3145_p0 = scmp.lt.u32.totalorder %s3138_s14, %s4204_s5 }
  0x56   : > { %p3141_p4 = pnand %p3139_p12, %p3655_p8 }
  0x58   : > { %p3142_p13 = pneg %p3141_p4 }
  0x5a   : > { %p3147_p2 = pnand %p3145_p0, %p3142_p13 }
  0x5c   : > { %3150 = shalt.err (!%p3147_p2)
}
  0x5d   : > { %s3151_s30 = scalar_lea.vmem %s3645_s15, 16  ;;  %s3158_s12 = scalar_lea.vmem %s3645_s15, 32 }
  0x5e   : > { %p3152_p5 = scmp.ne.s32.totalorder %s3645_s15, %s3151_s30  ;;  %p3159_p10 = scmp.lt.s32.totalorder %s3645_s15, %s3645_s15 }
  0x5f   : > { %p3160_p11 = scmp.lt.s32.totalorder %s3158_s12, %s3151_s30 }
  0x60   : > { %p3154_p7 = pnand %p3152_p5, %p3655_p8 }
  0x61   : > { %p3161_p12 = por %p3160_p11, %p3159_p10 }
  0x62   : > { %p3155_p9 = pneg %p3154_p7 }
  0x64   : > { %p3162_p4 = pnand %p3161_p12, %p3155_p9 }
  0x66   : > { %3165 = shalt.err (!%p3162_p4)
}
  0x67   : > { %2828 = dma.hbm_to_vmem [thread:$0]  (!%p3641_p6), %s4204_s5, 16, %s3645_s15, [#allocation12]  }
  0x68   : > { %s3517_s18 = smov [#allocation14]   ;;  %s3518_s20 = smov [#allocation17]  }
  0x69   : > { %s405_s19 = sshll.u32 %s3517_s18, 4  ;;  %s429_s29 = sshll.u32 %s3518_s20, 4  ;;  %s406_s19 = int_to_ptr.vmem [resolvable:$true] %s405_s19  ;;  %s430_s29 = int_to_ptr.vmem [resolvable:$true] %s429_s29 }
  0x6a   : > { %s3166_s17 = scalar_lea.hbm %s4180_s7, 16 }
  0x6b   : > { %p3167_p13 = scmp.ne.s32.totalorder %s4180_s7, %s3166_s17  ;;  %p3173_p5 = scmp.lt.u32.totalorder %s3166_s17, %s4180_s7 }
  0x6d   : > { %p3169_p0 = pnand %p3167_p13, %p3655_p8 }
  0x6f   : > { %p3170_p2 = pneg %p3169_p0 }
  0x71   : > { %p3175_p7 = pnand %p3173_p5, %p3170_p2 }
  0x73   : > { %3178 = shalt.err (!%p3175_p7)
}
  0x74   : > { %s3179_s15 = scalar_lea.vmem %s406_s19, 16  ;;  %s3186_s28 = scalar_lea.vmem %s406_s19, 32 }
  0x75   : > { %p3180_p9 = scmp.ne.s32.totalorder %s406_s19, %s3179_s15  ;;  %p3187_p12 = scmp.lt.s32.totalorder %s406_s19, %s406_s19 }
  0x76   : > { %p3188_p4 = scmp.lt.s32.totalorder %s3186_s28, %s3179_s15 }
  0x77   : > { %p3182_p10 = pnand %p3180_p9, %p3655_p8 }
  0x78   : > { %p3189_p1 = por %p3188_p4, %p3187_p12 }
  0x79   : > { %p3183_p11 = pneg %p3182_p10 }
  0x7b   : > { %p3190_p3 = pnand %p3189_p1, %p3183_p11 }
  0x7d   : > { %3193 = shalt.err (!%p3190_p3)
}
  0x7e   : > { %2834 = dma.hbm_to_vmem [thread:$0]  (!%p3641_p6), %s4180_s7, 16, %s406_s19, [#allocation15]  }
  0x7f   : > { %s3194_s17 = scalar_lea.hbm %s4182_s9, 64 }
  0x80   : > { %p3195_p13 = scmp.ne.s32.totalorder %s4182_s9, %s3194_s17  ;;  %p3201_p3 = scmp.lt.u32.totalorder %s3194_s17, %s4182_s9 }
  0x82   : > { %p3197_p0 = pnand %p3195_p13, %p3655_p8 }
  0x84   : > { %p3198_p1 = pneg %p3197_p0 }
  0x86   : > { %p3203_p2 = pnand %p3201_p3, %p3198_p1 }
  0x88   : > { %3206 = shalt.err (!%p3203_p2)
}
  0x89   : > { %s3207_s15 = scalar_lea.vmem %s430_s29, 64  ;;  %p3215_p10 = scmp.lt.s32.totalorder %s430_s29, %s430_s29 }
  0x8a   : > { %p3208_p5 = scmp.ne.s32.totalorder %s430_s29, %s3207_s15  ;;  %p3216_p11 = scmp.lt.s32.totalorder %s3207_s15, %s3207_s15 }
  0x8c   : > { %p3210_p7 = pnand %p3208_p5, %p3655_p8  ;;  %p3217_p12 = por %p3216_p11, %p3215_p10 }
  0x8e   : > { %p3211_p9 = pneg %p3210_p7 }
  0x90   : > { %p3218_p4 = pnand %p3217_p12, %p3211_p9 }
  0x92   : > { %3221 = shalt.err (!%p3218_p4)
}
  0x93   : > { %2840 = dma.hbm_to_vmem [thread:$0]  (!%p3641_p6), %s4182_s9, 64, %s430_s29, [#allocation18]  }
  0x94   : > { %s3519_s18 = smov [#allocation7]   ;;  %s3520_s14 = smov [#allocation10]  }
  0x95   : > { %s346_s20 = sshll.u32 %s3519_s18, 4  ;;  %s369_s16 = sshll.u32 %s3520_s14, 4  ;;  %s347_s20 = int_to_ptr.vmem [resolvable:$true] %s346_s20  ;;  %s370_s16 = int_to_ptr.vmem [resolvable:$true] %s369_s16 }
  0x96   : > { %s4205_s2 = sld [smem:[#allocation33_spill]] }
  0x9c   : > { %s3222_s30 = scalar_lea.hbm %s4205_s2, 16 }
  0x9d   : > { %p3223_p13 = scmp.ne.s32.totalorder %s4205_s2, %s3222_s30  ;;  %p3229_p3 = scmp.lt.u32.totalorder %s3222_s30, %s4205_s2 }
  0x9f   : > { %p3225_p0 = pnand %p3223_p13, %p3655_p8 }
  0xa1   : > { %p3226_p1 = pneg %p3225_p0 }
  0xa3   : > { %p3231_p2 = pnand %p3229_p3, %p3226_p1 }
  0xa5   : > { %3234 = shalt.err (!%p3231_p2)
}
  0xa6   : > { %s3235_s29 = scalar_lea.vmem %s347_s20, 16  ;;  %s3242_s28 = scalar_lea.vmem %s347_s20, 32 }
  0xa7   : > { %p3236_p5 = scmp.ne.s32.totalorder %s347_s20, %s3235_s29  ;;  %p3243_p10 = scmp.lt.s32.totalorder %s347_s20, %s347_s20 }
  0xa8   : > { %p3244_p11 = scmp.lt.s32.totalorder %s3242_s28, %s3235_s29 }
  0xa9   : > { %p3238_p7 = pnand %p3236_p5, %p3655_p8 }
  0xaa   : > { %p3245_p12 = por %p3244_p11, %p3243_p10 }
  0xab   : > { %p3239_p9 = pneg %p3238_p7 }
  0xad   : > { %p3246_p4 = pnand %p3245_p12, %p3239_p9 }
  0xaf   : > { %3249 = shalt.err (!%p3246_p4)
}
  0xb0   : > { %2819 = dma.hbm_to_vmem [thread:$0]  (!%p3641_p6), %s4205_s2, 16, %s347_s20, [#allocation6]  }
  0xb1   : > { %s3250_s30 = scalar_lea.hbm %s4177_s4, 1024 }
  0xb2   : > { %p3251_p13 = scmp.ne.s32.totalorder %s4177_s4, %s3250_s30  ;;  %p3257_p3 = scmp.lt.u32.totalorder %s3250_s30, %s4177_s4 }
  0xb4   : > { %p3253_p0 = pnand %p3251_p13, %p3655_p8 }
  0xb6   : > { %p3254_p1 = pneg %p3253_p0 }
  0xb8   : > { %p3259_p2 = pnand %p3257_p3, %p3254_p1 }
  0xba   : > { %3262 = shalt.err (!%p3259_p2)
}
  0xbb   : > { %s3263_s29 = scalar_lea.vmem %s370_s16, 1024  ;;  %p3271_p10 = scmp.lt.s32.totalorder %s370_s16, %s370_s16 }
  0xbc   : > { %p3264_p5 = scmp.ne.s32.totalorder %s370_s16, %s3263_s29  ;;  %p3272_p11 = scmp.lt.s32.totalorder %s3263_s29, %s3263_s29 }
  0xbe   : > { %p3266_p7 = pnand %p3264_p5, %p3655_p8  ;;  %p3273_p12 = por %p3272_p11, %p3271_p10 }
  0xc0   : > { %p3267_p9 = pneg %p3266_p7 }
  0xc2   : > { %p3274_p4 = pnand %p3273_p12, %p3267_p9 }
  0xc4   : > { %3277 = shalt.err (!%p3274_p4)
}
  0xc5   : > { %s4190_s20 = smov 64   ;;  %s4191_s28 = smov 4  }
  0xc6   : > { %2825 = dma.hbm_to_vmem [thread:$0]  (!%p3641_p6), %s4177_s4, 1024, %s370_s16, [#allocation9], %s4190_s20, %s4190_s20, %s4191_s28  }
  0xc7   : > { %s3523_s17 = smov [#allocation13]   ;;  %s3524_s30 = smov [#allocation16]  }
  0xc8   : > { %s394_s26 = sshll.u32 %s3523_s17, 4  ;;  %s415_s12 = sshll.u32 %s3524_s30, 4  ;;  %s395_s26 = int_to_ptr.vmem [resolvable:$true] %s394_s26  ;;  %s416_s12 = int_to_ptr.vmem [resolvable:$true] %s415_s12 }
  0xc9   : > { %s3278_s19 = scalar_lea.hbm %s4179_s6, 16 }
  0xca   : > { %p3279_p13 = scmp.ne.s32.totalorder %s4179_s6, %s3278_s19  ;;  %p3285_p3 = scmp.lt.u32.totalorder %s3278_s19, %s4179_s6 }
  0xcc   : > { %p3281_p0 = pnand %p3279_p13, %p3655_p8 }
  0xce   : > { %p3282_p1 = pneg %p3281_p0 }
  0xd0   : > { %p3287_p2 = pnand %p3285_p3, %p3282_p1 }
  0xd2   : > { %3290 = shalt.err (!%p3287_p2)
}
  0xd3   : > { %s3291_s16 = scalar_lea.vmem %s395_s26, 16  ;;  %s3298_s18 = scalar_lea.vmem %s395_s26, 32 }
  0xd4   : > { %p3292_p5 = scmp.ne.s32.totalorder %s395_s26, %s3291_s16  ;;  %p3299_p10 = scmp.lt.s32.totalorder %s395_s26, %s395_s26 }
  0xd5   : > { %p3300_p11 = scmp.lt.s32.totalorder %s3298_s18, %s3291_s16 }
  0xd6   : > { %p3294_p7 = pnand %p3292_p5, %p3655_p8 }
  0xd7   : > { %p3301_p12 = por %p3300_p11, %p3299_p10 }
  0xd8   : > { %p3295_p9 = pneg %p3294_p7 }
  0xda   : > { %p3302_p4 = pnand %p3301_p12, %p3295_p9 }
  0xdc   : > { %3305 = shalt.err (!%p3302_p4)
}
  0xdd   : > { %2831 = dma.hbm_to_vmem [thread:$0]  (!%p3641_p6), %s4179_s6, 16, %s395_s26, [#allocation12]  }
  0xde   : > { %s3306_s17 = scalar_lea.hbm %s4181_s8, 4096 }
  0xdf   : > { %p3307_p13 = scmp.ne.s32.totalorder %s4181_s8, %s3306_s17  ;;  %p3313_p3 = scmp.lt.u32.totalorder %s3306_s17, %s4181_s8 }
  0xe1   : > { %p3309_p0 = pnand %p3307_p13, %p3655_p8 }
  0xe3   : > { %p3310_p1 = pneg %p3309_p0 }
  0xe5   : > { %p3315_p2 = pnand %p3313_p3, %p3310_p1 }
  0xe7   : > { %3318 = shalt.err (!%p3315_p2)
}
  0xe8   : > { %s3319_s29 = scalar_lea.vmem %s416_s12, 4096  ;;  %p3327_p10 = scmp.lt.s32.totalorder %s416_s12, %s416_s12 }
  0xe9   : > { %p3320_p5 = scmp.ne.s32.totalorder %s416_s12, %s3319_s29  ;;  %p3328_p11 = scmp.lt.s32.totalorder %s3319_s29, %s3319_s29 }
  0xeb   : > { %p3322_p7 = pnand %p3320_p5, %p3655_p8  ;;  %p3329_p12 = por %p3328_p11, %p3327_p10 }
  0xed   : > { %p3323_p9 = pneg %p3322_p7 }
  0xef   : > { %p3330_p4 = pnand %p3329_p12, %p3323_p9 }
  0xf1   : > { %3333 = shalt.err (!%p3330_p4)
}
  0xf2   : > { %s3525_s26 = smov 256   ;;  %s3526_s16 = smov 16  }
  0xf3   : > { %2837 = dma.hbm_to_vmem [thread:$0]  (!%p3641_p6), %s4181_s8, 4096, %s416_s12, [#allocation15], %s3525_s26, %s3525_s26, %s3526_s16  }
  0xf4   : > { %s3527_s14 = smov [#allocation19]   ;;  %s3528_s5 = smov [#allocation20]  }
  0xf5   : > { %s439_s3 = sshll.u32 %s3527_s14, 4  ;;  %s453_s17 = sshll.u32 %s3528_s5, 4  ;;  %s440_s3 = int_to_ptr.vmem [resolvable:$true] %s439_s3  ;;  %s454_s17 = int_to_ptr.vmem [resolvable:$true] %s453_s17 }
  0xf6   : > { %s3334_s15 = scalar_lea.hbm %s4183_s10, 4096 }
  0xf7   : > { %p3335_p13 = scmp.ne.s32.totalorder %s4183_s10, %s3334_s15  ;;  %p3341_p3 = scmp.lt.u32.totalorder %s3334_s15, %s4183_s10 }
  0xf9   : > { %p3337_p0 = pnand %p3335_p13, %p3655_p8 }
  0xfb   : > { %p3338_p1 = pneg %p3337_p0 }
  0xfd   : > { %p3343_p2 = pnand %p3341_p3, %p3338_p1 }
  0xff   : > { %3346 = shalt.err (!%p3343_p2)
}
 0x100   : > { %s3347_s12 = scalar_lea.vmem %s440_s3, 4096  ;;  %p3355_p10 = scmp.lt.s32.totalorder %s440_s3, %s440_s3 }
 0x101   : > { %p3348_p5 = scmp.ne.s32.totalorder %s440_s3, %s3347_s12  ;;  %p3356_p11 = scmp.lt.s32.totalorder %s3347_s12, %s3347_s12 }
 0x103   : > { %p3350_p7 = pnand %p3348_p5, %p3655_p8  ;;  %p3357_p12 = por %p3356_p11, %p3355_p10 }
 0x105   : > { %p3351_p9 = pneg %p3350_p7 }
 0x107   : > { %p3358_p4 = pnand %p3357_p12, %p3351_p9 }
 0x109   : > { %3361 = shalt.err (!%p3358_p4)
}
 0x10a   : > { %s4206_s26 = smov 4   ;;  %s4207_s16 = smov 64  }
 0x10b   : > { %2843 = dma.hbm_to_vmem [thread:$0]  (!%p3641_p6), %s4183_s10, 4096, %s440_s3, [#allocation18], %s4207_s16, %s4207_s16, %s4206_s26  }
 0x10c   : > { %s3362_s14 = scalar_lea.hbm %s4184_s11, 16 }
 0x10d   : > { %p3363_p13 = scmp.ne.s32.totalorder %s4184_s11, %s3362_s14  ;;  %p3369_p3 = scmp.lt.u32.totalorder %s3362_s14, %s4184_s11 }
 0x10f   : > { %p3365_p0 = pnand %p3363_p13, %p3655_p8 }
 0x111   : > { %p3366_p1 = pneg %p3365_p0 }
 0x113   : > { %p3371_p2 = pnand %p3369_p3, %p3366_p1 }
 0x115   : > { %3374 = shalt.err (!%p3371_p2)
}
 0x116   : > { %s3375_s19 = scalar_lea.vmem %s454_s17, 16  ;;  %s3382_s3 = scalar_lea.vmem %s454_s17, 32 }
 0x117   : > { %p3376_p5 = scmp.ne.s32.totalorder %s454_s17, %s3375_s19  ;;  %p3383_p10 = scmp.lt.s32.totalorder %s454_s17, %s454_s17 }
 0x118   : > { %p3384_p11 = scmp.lt.s32.totalorder %s3382_s3, %s3375_s19 }
 0x119   : > { %p3378_p7 = pnand %p3376_p5, %p3655_p8 }
 0x11a   : > { %p3385_p12 = por %p3384_p11, %p3383_p10 }
 0x11b   : > { %p3379_p9 = pneg %p3378_p7 }
 0x11d   : > { %p3386_p4 = pnand %p3385_p12, %p3379_p9 }
 0x11f   : > { %3389 = shalt.err (!%p3386_p4)
}
 0x120   : > { %2846 = dma.hbm_to_vmem [thread:$0]  (!%p3641_p6), %s4184_s11, 16, %s454_s17, [#allocation21]  }
 0x121   : > { %s2436_s25 = sadd.s32 4294967294, %s3510_s24   ;;  %s3876_s13 = sadd.s32 1, %s3510_s24  }
 0x122   : > { %s41_s26 = sadd.s32 1, %s3506_s23  ;;  %s38_s16 = ssub.s32 %s3510_s24, %s3876_s13 }
 0x123   : > { %p48_p8 = scmp.ne.s32.totalorder %s3506_s23, %s3502_s22  ;;  %p39_p13 = scmp.eq.s32.totalorder %s38_s16, 0 }
 0x124   : > { %p49_p0 = scmp.eq.s32.totalorder %s3510_s24, 0  ;;  %p54_p1 = scmp.ne.s32.totalorder %s3502_s22, %s3498_s21 }
 0x125   : > { %p309_p3 = scmp.eq.s32.totalorder %s3623_s27, 1  ;;  %p4208_p5 = scmp.eq.s32.totalorder %s3623_s27, 0 }
 0x126   : > { %s3888_s20 = scalar_select %p39_p13, %s3506_s23, %s41_s26  }
 0x127   : > { %p50_p2 = por %p49_p0, %p48_p8  ;;  %p3892_p7 = por %p4208_p5, %p54_p1 }
 0x128   : > { %p3896_p6 = por %p309_p3, %p48_p8  ;;  %p315_p9 = scmp.eq.s32.totalorder %s2436_s25, 1 }
 0x129   : > { %p2866_p10 = scmp.lt.s32.totalorder %s3510_s24, 2  ;;  %s464_s18 = sand.u32 1, %s3506_s23  }
 0x12a   : > { %s4210_s17 = scalar_select %p3896_p6, 1, 0 }
 0x12b   : > { %p3902_p11 = por %p315_p9, %p54_p1  ;;  %s2450_s14 = sshll.u32 %s464_s18, 3 }
 0x12c   : > { %s2451_s5 = sshll.u32 %s3510_s24, 7  ;;  %s468_s19 = scalar_lea.vmem [#allocation2], %s2450_s14 }
 0x12d   : > { %s4211_s2 = scalar_select %p3902_p11, 1, 0 }
 0x12e   : > { %s3910_s15 = scalar_lea.hbm %s4173_s0, %s2451_s5  ;;  %s475_s3 = sshll.u32 %s468_s19, 4  ;;  %s3916_s3 = int_to_ptr.vmem [resolvable:$true] %s475_s3 }
 0x12f   : > { %p3912_p12 = pnand %p2866_p10, %p50_p2  ;;  %s465_s12 = scalar_lea.sflag [#allocation3], %s464_s18 }
 0x130   : > { %s3390_s25 = scalar_lea.hbm %s3910_s15, 128  ;;  %s3395_s14 = scalar_lea.hbm %s4173_s0, 256 }
 0x131   : > { %p3391_p4 = scmp.ne.s32.totalorder %s3910_s15, %s3390_s25  ;;  %p3392_p8 = pneg %p3912_p12 }
 0x132   : > { %p3396_p1 = scmp.lt.u32.totalorder %s3910_s15, %s4173_s0  ;;  %p3397_p3 = scmp.lt.u32.totalorder %s3395_s14, %s3390_s25 }
 0x133   : > { %p3393_p13 = pnand %p3392_p8, %p3391_p4  ;;  %p3399_p5 = scmp.lt.u32.totalorder %s3390_s25, %s3910_s15 }
 0x134   : > { %p3398_p2 = por %p3397_p3, %p3396_p1 }
 0x135   : > { %p3394_p0 = pneg %p3393_p13 }
 0x136   : > { %p3400_p9 = por %p3399_p5, %p3398_p2 }
 0x138   : > { %p3401_p10 = pnand %p3400_p9, %p3394_p0 }
 0x13a   : > { %3404 = shalt.err (!%p3401_p10)
}
 0x13b   : > { %s3405_s18 = scalar_lea.vmem %s3916_s3, 128  ;;  %s3529_s1 = smov [#allocation2]  }
 0x13c   : > { %p3406_p4 = scmp.ne.s32.totalorder %s3916_s3, %s3405_s18  ;;  %s3410_s19 = sshll.u32 %s3529_s1, 4  ;;  %s3411_s19 = int_to_ptr.vmem [resolvable:$false] %s3410_s19 }
 0x13d   : > { %s3412_s26 = scalar_lea.vmem %s3411_s19, 256  ;;  %p3413_p6 = scmp.lt.s32.totalorder %s3916_s3, %s3411_s19 }
 0x13e   : > { %p3408_p13 = pnand %p3406_p4, %p3392_p8  ;;  %p3414_p1 = scmp.lt.s32.totalorder %s3412_s26, %s3405_s18 }
 0x140   : > { %p3409_p11 = pneg %p3408_p13  ;;  %p3415_p3 = por %p3414_p1, %p3413_p6 }
 0x142   : > { %p3416_p2 = pnand %p3415_p3, %p3409_p11 }
 0x144   : > { %3419 = shalt.err (!%p3416_p2)
}
 0x145   : > { %2850 = dma.hbm_to_vmem [thread:$0]  (!%p3912_p12), %s3910_s15, 128, %s3916_s3, %s465_s12  }
 0x146   : > { %s4213_s25 = sld [smem:[#allocation31_spill]] }
 0x14c   : > { %p4214_p0 = scmp.ne.s32.totalorder %s4213_s25, 0 }
 0x14d   : > { %s3946_s16 = sand.u32 (!%p4214_p0), 1, %s3502_s22  }
 0x14e   : > { %484 = sbr.rel (%p4214_p0) target bundleno = 4051 (0xfd3), region = 68  ;;  %s2453_s14 = sshll.u32 (!%p4214_p0), %s3946_s16, 3 }
 0x14f   : > { %s487_s5 = scalar_lea.sflag (!%p4214_p0), [#allocation3], %s3946_s16  ;;  %s490_s30 = scalar_lea.vmem (!%p4214_p0), [#allocation2], %s2453_s14 }
 0x155   : > { %3465 = dma.done.wait (%p3892_p7), %s487_s5, 128  }
 0x156   : > { %3467 = vsyncadd (%p3892_p7), %s487_s5, 4294967168  ;;  %p4215_p6 = scmp.eq.s32.totalorder %s3623_s27, 0 }
 0x158   : > { %3469 = dma.done.wait (%p4215_p6), [#allocation6], 32   ;;  %p4216_p11 = pmov %p4215_p6 }
 0x159   : > { %p4217_p12 = pmov %p4215_p6 }
 0x15a   : > { %3471 = vsyncadd (%p4216_p11), [#allocation6], 4294967264 }
 0x15b   : > { %3473 = dma.done.wait (%p4217_p12), [#allocation9], 4096   ;;  %p4218_p8 = pmov %p4215_p6 }
 0x15c   : > { %p4219_p5 = pmov %p4215_p6 }
 0x15d   : > { %3475 = vsyncadd (%p4218_p8), [#allocation9], 4294963200 }
 0x15e   : > { %3477 = dma.done.wait (%p4219_p5), [#allocation12], 32   ;;  %p4220_p9 = pmov %p4219_p5 }
 0x15f   : > { %p4221_p7 = pmov %p4219_p5 }
 0x160   : > { %3479 = vsyncadd (%p4220_p9), [#allocation12], 4294967264 }
 0x161   : > { %3481 = dma.done.wait (%p4221_p7), [#allocation15], 4112   ;;  %p4222_p10 = pmov %p4219_p5 }
 0x162   : > { %p4223_p4 = pmov %p4219_p5 }
 0x163   : > { %3483 = vsyncadd (%p4222_p10), [#allocation15], 4294963184 }
 0x164   : > { %3485 = dma.done.wait (%p4223_p4), [#allocation18], 4160   ;;  %p4224_p13 = pmov %p4223_p4 }
 0x165   : > { %p4225_p1 = pmov %p4223_p4 }
 0x166   : > { %3487 = vsyncadd (%p4224_p13), [#allocation18], 4294963136 }
 0x167   : > { %3489 = dma.done.wait (%p4225_p1), [#allocation21], 16   ;;  %p4226_p3 = pmov %p4225_p1 }
 0x168   : > { %v3980_v0 = vld [vmem:[%s490_s30] sm:$0xff]  ;;  %v3530_v3 = vmov 0.0   ;;  %v2938_v5 = vld [vmem:[#allocation8 + $0x1c] ss:$12 sps:$4 sm:$0xff]   ;;  %v3531_v25 = vmov 0   ;;  %vm3532_vm0 = vmmov 0   ;;  %v847_v57 = vlaneseq }
 0x169   : > { %3491 = vsyncadd (%p4226_p3), [#allocation21], 4294967280  ;;  %579 = vadd.xlane.f32.xlu0 %v3980_v0  ;;  %v2934_v1 = vld [vmem:[#allocation8 + $0x4] ss:$12 sps:$4 sm:$0xff]   ;;  %v2936_v2 = vld [vmem:[#allocation8] ss:$12 sps:$4 sm:$0xff]   ;;  %2665 = vmatprep.subr.bf16.mxu1 %v3530_v3 }
 0x16a   : > { %v2937_v4 = vld [vmem:[#allocation8 + $0x8] ss:$12 sps:$4 sm:$0xff]   ;;  %v2940_v6 = vld [vmem:[#allocation8 + $0x18] ss:$12 sps:$4 sm:$0xff]   ;;  %766 = vmatprep.subr.bf16.mxu0 %v2934_v1  ;;  %v2941_v7 = vld [vmem:[#allocation8 + $0x20] ss:$12 sps:$4 sm:$0xff]   ;;  %798 = vmatprep.mubr.bf16.mxu0 %v3531_v25 }
 0x16b   : > { %v2942_v8 = vld [vmem:[#allocation8 + $0x34] ss:$12 sps:$4 sm:$0xff]   ;;  %767 = vmatpush1.bf16.msra.mxu0 %v2936_v2  ;;  %2666 = vmatpush3.bf16.msra.mxu1 %v2937_v4  ;;  %v2944_v13 = vld [vmem:[#allocation8 + $0x30] ss:$12 sps:$4 sm:$0xff]   ;;  %v2945_v14 = vld [vmem:[#allocation8 + $0x38] ss:$12 sps:$4 sm:$0xff]  }
 0x16c   : > { %768 = vmatprep.subr.bf16.mxu0 %v2938_v5  ;;  %2667 = vmatprep.subr.bf16.mxu1 %v3530_v3  ;;  %v2946_v15 = vld [vmem:[#allocation8 + $0x4c] ss:$12 sps:$4 sm:$0xff]   ;;  %v2948_v16 = vld [vmem:[#allocation8 + $0x48] ss:$12 sps:$4 sm:$0xff]   ;;  %v2949_v17 = vld [vmem:[#allocation8 + $0x50] ss:$12 sps:$4 sm:$0xff]  }
 0x16d   : > { %v2950_v18 = vld [vmem:[#allocation8 + $0x64] ss:$12 sps:$4 sm:$0xff]   ;;  %v2952_v19 = vld [vmem:[#allocation8 + $0x60] ss:$12 sps:$4 sm:$0xff]   ;;  %v2953_v20 = vld [vmem:[#allocation8 + $0x68] ss:$12 sps:$4 sm:$0xff]   ;;  %2681 = vmatprep.mubr.msk.bf16.mxu1 %vm3532_vm0, %v3530_v3 }
 0x16e   : > { %v2954_v21 = vld [vmem:[#allocation8 + $0x7c] ss:$12 sps:$4 sm:$0xff]   ;;  %v2956_v22 = vld [vmem:[#allocation8 + $0x78] ss:$12 sps:$4 sm:$0xff]   ;;  %v2957_v23 = vld [vmem:[#allocation8 + $0x80] ss:$12 sps:$4 sm:$0xff]  }
 0x16f   : > { %769 = vmatpush1.bf16.msra.mxu0 %v2940_v6  ;;  %2668 = vmatpush3.bf16.msra.mxu1 %v2941_v7  ;;  %v2958_v24 = vld [vmem:[#allocation8 + $0x94] ss:$12 sps:$4 sm:$0xff]   ;;  %v2960_v26 = vld [vmem:[#allocation8 + $0x90] ss:$12 sps:$4 sm:$0xff]   ;;  %v2961_v27 = vld [vmem:[#allocation8 + $0x98] ss:$12 sps:$4 sm:$0xff]  }
 0x170   : > { %770 = vmatprep.subr.bf16.mxu0 %v2942_v8  ;;  %2669 = vmatprep.subr.bf16.mxu1 %v3530_v3  ;;  %v2962_v28 = vld [vmem:[#allocation8 + $0xac] ss:$12 sps:$4 sm:$0xff]   ;;  %v2964_v29 = vld [vmem:[#allocation8 + $0xa8] ss:$12 sps:$4 sm:$0xff]   ;;  %v2965_v30 = vld [vmem:[#allocation8 + $0xb0] ss:$12 sps:$4 sm:$0xff]  }
 0x171   : > { %v2466_v35 = vld [vmem:[#allocation5] ss:$0 sm:$0xff]  ;;  %v2467_v37 = vld [vmem:[#allocation7] ss:$0 sm:$0xff]  ;;  %vm920_vm1 = vcmask 1043456   ;;  %vm855_vm2 = vcmask 261120  }
 0x172   : > { %s3533_s28 = smov 96   ;;  %v4026_v58 = vshrl.u32 %v847_v57, 7  ;;  %v4028_v59 = vand.u32 127, %v847_v57  ;;  %vm904_vm4 = vcmask 64512   ;;  %s3534_s15 = smov 64  }
 0x173   : > { %771 = vmatpush1.bf16.msra.mxu0 %v2944_v13  ;;  %2670 = vmatpush3.bf16.msra.mxu1 %v2945_v14  ;;  %s3535_s3 = smov 32   ;;  %s2581_s29 = sshll.u32 %s3623_s27, 7 }
 0x174   : > { %2671 = vmatprep.subr.bf16.mxu1 %v3530_v3  ;;  %772 = vmatprep.subr.bf16.mxu0 %v2946_v15  ;;  %vm851_vm3 = vcmp.le.s32.totalorder %v4028_v59, %v4026_v58  ;;  %v2972_v59 = vld [vmem:[#allocation10 + $0x30] sm:$0xff]   ;;  %s574_s12 = scalar_lea.vmem [#allocation22], %s2453_s14  ;;  %s4227_s26 = sld [smem:[#allocation36_spill]] }
 0x175   : > { %s2261_s18 = sshll.u32 %s574_s12, 4  ;;  %s2248_s5 = scalar_lea.sflag [#allocation4], %s3946_s16  ;;  %s4131_s18 = int_to_ptr.vmem [resolvable:$true] %s2261_s18 }
 0x176   : > { %s3420_s30 = scalar_lea.vmem %s4131_s18, 128  ;;  %p4228_p0 = scmp.ne.s32.totalorder %s4210_s17, 0 }
 0x177   : > { %773 = vmatpush1.bf16.msra.mxu0 %v2948_v16  ;;  %2672 = vmatpush3.bf16.msra.mxu1 %v2949_v17  ;;  %p3421_p2 = scmp.ne.s32.totalorder %s4131_s18, %s3420_s30  ;;  %s3536_s27 = smov [#allocation22]  }
 0x178   : > { %2673 = vmatprep.subr.bf16.mxu1 %v3530_v3  ;;  %774 = vmatprep.subr.bf16.mxu0 %v2950_v18  ;;  %s3424_s14 = sshll.u32 %s3536_s27, 4  ;;  %s3425_s14 = int_to_ptr.vmem [resolvable:$false] %s3424_s14 }
 0x179   : > { %p3422_p6 = pnand %p3421_p2, %p4228_p0  ;;  %p3427_p12 = scmp.lt.s32.totalorder %s4131_s18, %s3425_s14 }
 0x17a   : > { %s4129_s25 = scalar_lea.hbm %s4227_s26, %s2581_s29 }
 0x17b   : > { %775 = vmatpush1.bf16.msra.mxu0 %v2952_v19  ;;  %2674 = vmatpush3.bf16.msra.mxu1 %v2953_v20  ;;  %p3423_p11 = pneg %p3422_p6 }
 0x17c   : > { %776 = vmatprep.subr.bf16.mxu0 %v2954_v21  ;;  %2675 = vmatprep.subr.bf16.mxu1 %v3530_v3 }
 0x17f   : > { %777 = vmatpush1.bf16.msra.mxu0 %v2956_v22  ;;  %2676 = vmatpush3.bf16.msra.mxu1 %v2957_v23 }
 0x180   : > { %778 = vmatprep.subr.bf16.mxu0 %v2958_v24  ;;  %2677 = vmatprep.subr.bf16.mxu1 %v3530_v3 }
 0x183   : > { %779 = vmatpush1.bf16.msra.mxu0 %v2960_v26  ;;  %2678 = vmatpush3.bf16.msra.mxu1 %v2961_v27  ;;  %v2968_v27 = vld [vmem:[#allocation10 + $0x10] sm:$0xff]  }
 0x184   : > { %780 = vmatprep.subr.bf16.mxu0 %v2962_v28  ;;  %2679 = vmatprep.subr.bf16.mxu1 %v3530_v3  ;;  %v2969_v28 = vld [vmem:[#allocation10 + $0x18] sm:$0xff]  }
 0x187   : > { %781 = vmatpush1.bf16.msra.mxu0 %v2964_v29  ;;  %2680 = vmatpush3.bf16.msra.mxu1 %v2965_v30 }
 0x188   : > { %2691 = vmatprep.subr.bf16.mxu1 %v3530_v3  ;;  %2685 = vmatprep.subr.bf16.mxu0 %v3530_v3 }
 0x1f6   : > { %v580_v9 = vpop.xlane.xlu0 %579 }
 0x1f7   : > { %v582_v10 = vmul.f32 0.0078125, %v580_v9 }
 0x1f9   : > { %v583_v11 = vsub.f32 %v3980_v0, %v582_v10 }
 0x1fb   : > { %v584_v12 = vmul.f32 %v583_v11, %v583_v11 }
 0x1fd   : > { %585 = vadd.xlane.f32.xlu0 %v584_v12 }
 0x28a   : > { %v586_v31 = vpop.xlane.xlu0 %585 }
 0x28b   : > { %v587_v32 = vmul.f32 0.0078125, %v586_v31 }
 0x28d   : > { %v588_v33 = vadd.f32 1e-05, %v587_v32 }
 0x28f   : > { %3054 = vrsqrt.f32 %v588_v33 }
 0x299   : > { %v3055_v34 = vpop.eup %3054 }
 0x29a   : > { %v590_v36 = vmul.f32 %v3055_v34, %v583_v11  ;;  %v2966_v34 = vld [vmem:[#allocation10] sm:$0xff]  }
 0x29c   : > { %v597_v38 = vmul.f32 %v2466_v35, %v590_v36  ;;  %v2967_v36 = vld [vmem:[#allocation10 + $0x8] sm:$0xff]  }
 0x29e   : > { %v604_v39 = vadd.f32 %v2467_v37, %v597_v38 }
 0x2a0   : > { %v605_v40 = vpack.c.bf16 %v604_v39, %v604_v39 }
 0x2a2   : > { %799 = vmatmul.mubr.bf16.vlgmr.msra.gmra.mrb[0].mxu0 %v605_v40  ;;  %2682 = vmatmul.mubr.bf16.vlgmr.msra.gmra.mrb[0].mxu1 %v605_v40 }
 0x2a3   : > { %2687 = vmatprep.mubr.msk.bf16.mxu0 %vm3532_vm0, %v3530_v3  ;;  %2693 = vmatprep.mubr.msk.bf16.mxu1 %vm3532_vm0, %v3530_v3 }
 0x375   : > { %v800_v41 = vpop.f32.mrb[0].mxu0  ;;  %v841_v42 = vpop.f32.mrb[0].mxu1 }
 0x376   : > { %v4001_v43 = vpack.c.bf16 %v841_v42, %v841_v42  ;;  %v802_v44 = vpop.f32.mrb[1].mxu0  ;;  %v2683_v45 = vpop.f32.mrb[1].mxu1  ;;  %v4012_v53 = vpack.c.bf16 %v800_v41, %v800_v41 }
 0x377   : > { %v4003_v46 = vpack.c.bf16 %v802_v44, %v802_v44  ;;  %v804_v47 = vpop.f32.mrb[2].mxu0  ;;  %v844_v48 = vpop.f32.mrb[2].mxu1 }
 0x378   : > { %v805_v49 = vpop.f32.mrb[3].mxu0  ;;  %v2684_v50 = vpop.f32.mrb[3].mxu1  ;;  %v922_v51 = vsel %vm920_vm1, %v4001_v43, 0 }
 0x379   : > { %2692 = vmatpush3.bf16.msra.mxu1 %v922_v51  ;;  %973 = vrot.lane.b32.xlu1 %v4003_v46, %s3533_s28  ;;  %v860_v52 = vsel %vm855_vm2, %v4003_v46, 0 }
 0x37a   : > { %2686 = vmatpush3.bf16.xpose.msra.mxu0 %v860_v52  ;;  %2703 = vmatprep.subr.bf16.mxu1 %v3530_v3 }
 0x37b   : > { %2697 = vmatprep.subr.bf16.mxu0 %v3530_v3 }
 0x37d   : > { %970 = vrot.lane.b32.xlu1 %v4012_v53, %s3533_s28 }
 0x381   : > { %2688 = vmatmul.mubr.msk.bf16.vlgmr.msra.gmra.mrb[4].mxu0 %vm855_vm2, %v4012_v53 }
 0x382   : > { %2699 = vmatprep.mubr.msk.bf16.mxu0 %vm3532_vm0, %v3530_v3 }
 0x3eb   : > { %v974_v54 = vpop.permute.xlu1 %973 }
 0x3ec   : > { %v979_v55 = vsel %vm855_vm2, %v974_v54, 0 }
 0x3ed   : > { %2698 = vmatpush3.bf16.xpose.msra.mxu0 %v979_v55 }
 0x3ee   : > { %2709 = vmatprep.subr.bf16.mxu0 %v3530_v3 }
 0x3ef   : > { %v971_v56 = vpop.permute.xlu1 %970 }
 0x3f4   : > { %2700 = vmatmul.mubr.msk.bf16.vlgmr.msra.gmra.mrb[8].mxu0 %vm855_vm2, %v971_v56 }
 0x3f5   : > { %2713 = vmatprep.mubr.msk.bf16.mxu0 %vm3532_vm0, %v3530_v3  ;;  %2710 = vmatpush3.bf16.msra.mxu0 %v2968_v27 }
 0x3f6   : > { %2711 = vmatprep.subr.bf16.mxu0 %v3530_v3 }
 0x3f9   : > { %2712 = vmatpush3.bf16.msra.mxu0 %v2969_v28 }
 0x3fa   : > { %2725 = vmatprep.subr.bf16.mxu0 %v3530_v3 }
 0x454   : > { %v896_v60 = vpop.f32.mrb[4].mxu0 }
 0x455   : > { %v902_v61 = vmul.f32 0.088388346, %v896_v60  ;;  %v2689_v62 = vpop.f32.mrb[5].mxu0 }
 0x456   : > { %v899_v63 = vpop.f32.mrb[6].mxu0 }
 0x457   : > { %v2690_v1 = vpop.f32.mrb[7].mxu0  ;;  %v903_v2 = vsel %vm851_vm3, %v902_v61, -inf }
 0x458   : > { %v905_v4 = vsel %vm904_vm4, %v903_v2, -inf }
 0x459   : > { %906 = vmax.xlane.f32.xlu0 %v905_v4 }
 0x4c7   : > { %v1015_v5 = vpop.f32.mrb[8].mxu0 }
 0x4c8   : > { %v1021_v6 = vmul.f32 0.088388346, %v1015_v5  ;;  %v2701_v7 = vpop.f32.mrb[9].mxu0 }
 0x4c9   : > { %v1018_v8 = vpop.f32.mrb[10].mxu0 }
 0x4ca   : > { %v2702_v9 = vpop.f32.mrb[11].mxu0  ;;  %v1022_v10 = vsel %vm851_vm3, %v1021_v6, -inf }
 0x4cb   : > { %v1023_v11 = vsel %vm904_vm4, %v1022_v10, -inf }
 0x4cc   : > { %1024 = vmax.xlane.f32.xlu1 %v1023_v11 }
 0x4dd   : > { %1199 = vrot.lane.b32.xlu1 %v4012_v53, %s3534_s15 }
 0x4e6   : > { %v907_v12 = vpop.xlane.xlu0 %906 }
 0x4e7   : > { %v908_v13 = vsub.f32 %v903_v2, %v907_v12 }
 0x4e9   : > { %v909_v14 = vmul.f32 1.442695, %v908_v13 }
 0x4eb   : > { %3056 = vpow2.f32 %v909_v14 }
 0x4f5   : > { %v3057_v15 = vpop.eup %3056 }
 0x4f6   : > { %v911_v16 = vsel %vm904_vm4, %v3057_v15, 0.0 }
 0x4f7   : > { %912 = vadd.xlane.f32.xlu0 %v911_v16  ;;  %v2970_v16 = vld [vmem:[#allocation10 + $0x20] sm:$0xff]  }
 0x559   : > { %v1025_v17 = vpop.xlane.xlu1 %1024 }
 0x55a   : > { %v1026_v18 = vsub.f32 %v1022_v10, %v1025_v17 }
 0x55c   : > { %v1027_v19 = vmul.f32 1.442695, %v1026_v18 }
 0x55d   : > { %v1200_v51 = vpop.permute.xlu1 %1199 }
 0x55e   : > { %3058 = vpow2.f32 %v1027_v19 }
 0x568   : > { %v3059_v20 = vpop.eup %3058 }
 0x569   : > { %v1029_v21 = vsel %vm904_vm4, %v3059_v20, 0.0 }
 0x56a   : > { %1030 = vadd.xlane.f32.xlu0 %v1029_v21 }
 0x580   : > { %1036 = vrot.lane.b32.xlu0 %v4001_v43, %s3533_s28  ;;  %s3426_s28 = scalar_lea.vmem %s3425_s14, 256 }
 0x581   : > { %p3428_p8 = scmp.lt.s32.totalorder %s3426_s28, %s3420_s30 }
 0x583   : > { %p3429_p5 = por %p3428_p8, %p3427_p12 }
 0x584   : > { %v913_v22 = vpop.xlane.xlu0 %912  ;;  %1201 = vrot.lane.b32.xlu0 %v4003_v46, %s3534_s15 }
 0x585   : > { %3060 = vrcp.f32 %v913_v22  ;;  %v2971_v22 = vld [vmem:[#allocation10 + $0x28] sm:$0xff]   ;;  %p3430_p9 = pnand %p3429_p5, %p3423_p11 }
 0x58f   : > { %v3061_v23 = vpop.eup %3060 }
 0x590   : > { %v915_v24 = vmul.f32 %v3061_v23, %v3057_v15 }
 0x592   : > { %v916_v26 = vpack.c.bf16 %v915_v24, %v915_v24 }
 0x594   : > { %2694 = vmatmul.mubr.msk.bf16.vlgmr.msra.gmra.mrb[4].mxu1 %vm904_vm4, %v916_v26 }
 0x595   : > { %2705 = vmatprep.mubr.msk.bf16.mxu1 %vm3532_vm0, %v3530_v3 }
 0x5f7   : > { %v1031_v29 = vpop.xlane.xlu0 %1030 }
 0x5f8   : > { %3062 = vrcp.f32 %v1031_v29 }
 0x5fb   : > { %v1037_v30 = vpop.permute.xlu0 %1036 }
 0x5fc   : > { %v1042_v31 = vsel %vm920_vm1, %v1037_v30, 0 }
 0x5fd   : > { %2704 = vmatpush3.bf16.msra.mxu1 %v1042_v31 }
 0x5fe   : > { %2717 = vmatprep.subr.bf16.mxu1 %v3530_v3 }
 0x5ff   : > { %v1202_v42 = vpop.permute.xlu0 %1201 }
 0x600   : > { %v1207_v49 = vsel %vm855_vm2, %v1202_v42, 0 }
 0x602   : > { %v3063_v32 = vpop.eup %3062 }
 0x603   : > { %v1033_v33 = vmul.f32 %v3063_v32, %v3059_v20 }
 0x605   : > { %v1034_v35 = vpack.c.bf16 %v1033_v33, %v1033_v33 }
 0x607   : > { %2706 = vmatmul.mubr.msk.bf16.vlgmr.msra.gmra.mrb[8].mxu1 %vm904_vm4, %v1034_v35 }
 0x608   : > { %2718 = vmatpush3.bf16.msra.mxu1 %v2966_v34  ;;  %2721 = vmatprep.mubr.msk.bf16.mxu1 %vm3532_vm0, %v3530_v3 }
 0x609   : > { %2719 = vmatprep.subr.bf16.mxu1 %v3530_v3 }
 0x60c   : > { %2720 = vmatpush3.bf16.msra.mxu1 %v2967_v36 }
 0x60d   : > { %2731 = vmatprep.subr.bf16.mxu1 %v3530_v3 }
 0x667   : > { %v958_v37 = vpop.f32.mrb[4].mxu1 }
 0x668   : > { %v964_v38 = vpack.c.bf16 %v958_v37, %v958_v37  ;;  %v2695_v39 = vpop.f32.mrb[5].mxu1 }
 0x669   : > { %v961_v40 = vpop.f32.mrb[6].mxu1 }
 0x66a   : > { %v2696_v41 = vpop.f32.mrb[7].mxu1  ;;  %2722 = vmatmul.mubr.msk.bf16.vlgmr.msra.gmra.mrb[12].mxu1 %vm855_vm2, %v964_v38 }
 0x66b   : > { %2733 = vmatprep.mubr.msk.bf16.mxu1 %vm3532_vm0, %v3530_v3 }
 0x6da   : > { %v1078_v44 = vpop.f32.mrb[8].mxu1 }
 0x6db   : > { %v1084_v45 = vpack.c.bf16 %v1078_v44, %v1078_v44  ;;  %v2707_v47 = vpop.f32.mrb[9].mxu1 }
 0x6dc   : > { %v1081_v48 = vpop.f32.mrb[10].mxu1 }
 0x6dd   : > { %v2708_v50 = vpop.f32.mrb[11].mxu1  ;;  %2714 = vmatmul.mubr.msk.bf16.vlgmr.msra.gmra.mrb[12].mxu0 %vm855_vm2, %v1084_v45 }
 0x6de   : > { %2726 = vmatpush3.bf16.xpose.msra.mxu0 %v1207_v49  ;;  %2727 = vmatprep.mubr.msk.bf16.mxu0 %vm3532_vm0, %v3530_v3 }
 0x6df   : > { %2737 = vmatprep.subr.bf16.mxu0 %v3530_v3 }
 0x6e5   : > { %2728 = vmatmul.mubr.msk.bf16.vlgmr.msra.gmra.mrb[16].mxu0 %vm855_vm2, %v1200_v51 }
 0x6e6   : > { %2741 = vmatprep.mubr.msk.bf16.mxu0 %vm3532_vm0, %v3530_v3  ;;  %2738 = vmatpush3.bf16.msra.mxu0 %v2970_v16  ;;  %v2989_v16 = vld [vmem:[#allocation16 + $0x48] ss:$16 sps:$4 sm:$0xff]  }
 0x6e7   : > { %2739 = vmatprep.subr.bf16.mxu0 %v3530_v3 }
 0x6ea   : > { %2740 = vmatpush3.bf16.msra.mxu0 %v2971_v22  ;;  %v2995_v22 = vld [vmem:[#allocation16 + $0x68] ss:$16 sps:$4 sm:$0xff]  }
 0x6eb   : > { %2751 = vmatprep.subr.bf16.mxu0 %v3530_v3 }
 0x73d   : > { %v1193_v52 = vpop.f32.mrb[12].mxu1 }
 0x73e   : > { %v2723_v54 = vpop.f32.mrb[13].mxu1 }
 0x73f   : > { %v1196_v55 = vpop.f32.mrb[14].mxu1  ;;  %v2973_v54 = vld [vmem:[#allocation10 + $0x38] sm:$0xff]  }
 0x740   : > { %v2724_v56 = vpop.f32.mrb[15].mxu1 }
 0x7b0   : > { %v1138_v57 = vpop.f32.mrb[12].mxu0 }
 0x7b1   : > { %v4071_v60 = vadd.f32 %v1193_v52, %v1138_v57  ;;  %v2715_v61 = vpop.f32.mrb[13].mxu0 }
 0x7b2   : > { %v1141_v62 = vpop.f32.mrb[14].mxu0 }
 0x7b3   : > { %v2716_v63 = vpop.f32.mrb[15].mxu0 }
 0x7b8   : > { %v1243_v1 = vpop.f32.mrb[16].mxu0 }
 0x7b9   : > { %v1249_v2 = vmul.f32 0.088388346, %v1243_v1  ;;  %v2729_v4 = vpop.f32.mrb[17].mxu0 }
 0x7ba   : > { %v1246_v5 = vpop.f32.mrb[18].mxu0 }
 0x7bb   : > { %v2730_v6 = vpop.f32.mrb[19].mxu0  ;;  %v1250_v7 = vsel %vm851_vm3, %v1249_v2, -inf  ;;  %v2512_v2 = vld [vmem:[#allocation11] ss:$0 sm:$0xff] }
 0x7bc   : > { %v1251_v8 = vsel %vm904_vm4, %v1250_v7, -inf }
 0x7bd   : > { %1252 = vmax.xlane.f32.xlu0 %v1251_v8  ;;  %v2976_v8 = vld [vmem:[#allocation16 + $0x4] ss:$16 sps:$4 sm:$0xff]  }
 0x7d3   : > { %1263 = vrot.lane.b32.xlu0 %v4001_v43, %s3534_s15 }
 0x7d7   : > { %1372 = vrot.lane.b32.xlu0 %v4012_v53, %s3535_s3 }
 0x84a   : > { %v1253_v9 = vpop.xlane.xlu0 %1252 }
 0x84b   : > { %v1254_v10 = vsub.f32 %v1250_v7, %v1253_v9  ;;  %v2974_v7 = vld [vmem:[#allocation16] ss:$16 sps:$4 sm:$0xff]   ;;  %v2977_v9 = vld [vmem:[#allocation16 + $0x8] ss:$16 sps:$4 sm:$0xff]  }
 0x84d   : > { %v1255_v11 = vmul.f32 1.442695, %v1254_v10  ;;  %v2979_v10 = vld [vmem:[#allocation16 + $0xc] ss:$16 sps:$4 sm:$0xff]  }
 0x84e   : > { %v1264_v12 = vpop.permute.xlu0 %1263 }
 0x84f   : > { %3064 = vpow2.f32 %v1255_v11  ;;  %v1269_v13 = vsel %vm920_vm1, %v1264_v12, 0  ;;  %v2982_v11 = vld [vmem:[#allocation16 + $0x24] ss:$16 sps:$4 sm:$0xff]   ;;  %v2985_v12 = vld [vmem:[#allocation16 + $0x2c] ss:$16 sps:$4 sm:$0xff]  }
 0x850   : > { %2732 = vmatpush3.bf16.msra.mxu1 %v1269_v13  ;;  %v2983_v13 = vld [vmem:[#allocation16 + $0x28] ss:$16 sps:$4 sm:$0xff]  }
 0x851   : > { %2745 = vmatprep.subr.bf16.mxu1 %v3530_v3 }
 0x859   : > { %v3065_v14 = vpop.eup %3064 }
 0x85a   : > { %v1257_v15 = vsel %vm904_vm4, %v3065_v14, 0.0 }
 0x85b   : > { %1258 = vadd.xlane.f32.xlu1 %v1257_v15  ;;  %v2986_v15 = vld [vmem:[#allocation16 + $0x40] ss:$16 sps:$4 sm:$0xff]  }
 0x86c   : > { %1374 = vrot.lane.b32.xlu1 %v4003_v46, %s3535_s3  ;;  %v1373_v46 = vpop.permute.xlu0 %1372 }
 0x8e8   : > { %v1259_v53 = vpop.xlane.xlu1 %1258 }
 0x8e9   : > { %3066 = vrcp.f32 %v1259_v53 }
 0x8ec   : > { %v1375_v19 = vpop.permute.xlu1 %1374 }
 0x8ed   : > { %v1380_v21 = vsel %vm855_vm2, %v1375_v19, 0 }
 0x8f3   : > { %v3067_v17 = vpop.eup %3066 }
 0x8f4   : > { %v1261_v18 = vmul.f32 %v3067_v17, %v3065_v14  ;;  %v2988_v14 = vld [vmem:[#allocation16 + $0x44] ss:$16 sps:$4 sm:$0xff]  }
 0x8f6   : > { %v1262_v20 = vpack.c.bf16 %v1261_v18, %v1261_v18 }
 0x8f8   : > { %2734 = vmatmul.mubr.msk.bf16.vlgmr.msra.gmra.mrb[16].mxu1 %vm904_vm4, %v1262_v20  ;;  %v2994_v20 = vld [vmem:[#allocation16 + $0x64] ss:$16 sps:$4 sm:$0xff]  }
 0x8f9   : > { %2746 = vmatpush3.bf16.xpose.msra.mxu1 %v1380_v21  ;;  %2747 = vmatprep.mubr.msk.bf16.mxu1 %vm3532_vm0, %v3530_v3  ;;  %v2997_v21 = vld [vmem:[#allocation16 + $0x6c] ss:$16 sps:$4 sm:$0xff]  }
 0x8fa   : > { %2757 = vmatprep.subr.bf16.mxu1 %v3530_v3 }
 0x900   : > { %2748 = vmatmul.mubr.msk.bf16.vlgmr.msra.gmra.mrb[20].mxu1 %vm855_vm2, %v1373_v46  ;;  %v2992_v46 = vld [vmem:[#allocation16 + $0x60] ss:$16 sps:$4 sm:$0xff]  }
 0x901   : > { %2761 = vmatprep.mubr.msk.bf16.mxu1 %vm3532_vm0, %v3530_v3  ;;  %2758 = vmatpush3.bf16.msra.mxu1 %v2972_v59 }
 0x902   : > { %2759 = vmatprep.subr.bf16.mxu1 %v3530_v3 }
 0x905   : > { %2760 = vmatpush3.bf16.msra.mxu1 %v2973_v54 }
 0x906   : > { %1837 = vmatprep.subr.bf16.mxu1 %v2979_v10  ;;  %v3041_v10 = vld [vmem:[#allocation19 + $0xa0] sm:$0xff]  }
 0x9cb   : > { %v1305_v23 = vpop.f32.mrb[16].mxu1 }
 0x9cc   : > { %v1311_v24 = vpack.c.bf16 %v1305_v23, %v1305_v23  ;;  %v2735_v26 = vpop.f32.mrb[17].mxu1  ;;  %v3000_v23 = vld [vmem:[#allocation16 + $0x84] ss:$16 sps:$4 sm:$0xff]  }
 0x9cd   : > { %v1308_v27 = vpop.f32.mrb[18].mxu1  ;;  %v2998_v26 = vld [vmem:[#allocation16 + $0x80] ss:$16 sps:$4 sm:$0xff]  }
 0x9ce   : > { %v2736_v28 = vpop.f32.mrb[19].mxu1  ;;  %2742 = vmatmul.mubr.msk.bf16.vlgmr.msra.gmra.mrb[20].mxu0 %vm855_vm2, %v1311_v24  ;;  %v3003_v24 = vld [vmem:[#allocation16 + $0x8c] ss:$16 sps:$4 sm:$0xff]   ;;  %v3001_v27 = vld [vmem:[#allocation16 + $0x88] ss:$16 sps:$4 sm:$0xff]  }
 0x9cf   : > { %2753 = vmatprep.mubr.msk.bf16.mxu0 %vm3532_vm0, %v3530_v3  ;;  %v3006_v28 = vld [vmem:[#allocation16 + $0xa4] ss:$16 sps:$4 sm:$0xff]  }
 0x9d3   : > { %v1416_v29 = vpop.f32.mrb[20].mxu1 }
 0x9d4   : > { %v1422_v30 = vmul.f32 0.088388346, %v1416_v29  ;;  %v2749_v31 = vpop.f32.mrb[21].mxu1  ;;  %v3009_v29 = vld [vmem:[#allocation16 + $0xac] ss:$16 sps:$4 sm:$0xff]  }
 0x9d5   : > { %v1419_v32 = vpop.f32.mrb[22].mxu1  ;;  %v3007_v31 = vld [vmem:[#allocation16 + $0xa8] ss:$16 sps:$4 sm:$0xff]  }
 0x9d6   : > { %v2750_v33 = vpop.f32.mrb[23].mxu1  ;;  %v1423_v34 = vsel %vm851_vm3, %v1422_v30, -inf  ;;  %v3004_v30 = vld [vmem:[#allocation16 + $0xa0] ss:$16 sps:$4 sm:$0xff]   ;;  %v3012_v32 = vld [vmem:[#allocation16 + $0xc4] ss:$16 sps:$4 sm:$0xff]  }
 0x9d7   : > { %v1424_v35 = vsel %vm904_vm4, %v1423_v34, -inf  ;;  %v3015_v33 = vld [vmem:[#allocation16 + $0xcc] ss:$16 sps:$4 sm:$0xff]  }
 0x9d8   : > { %1425 = vmax.xlane.f32.xlu0 %v1424_v35  ;;  %v3013_v35 = vld [vmem:[#allocation16 + $0xc8] ss:$16 sps:$4 sm:$0xff]  }
 0x9ee   : > { %1436 = vrot.lane.b32.xlu0 %v4001_v43, %s3535_s3 }
 0xa65   : > { %v1426_v36 = vpop.xlane.xlu0 %1425 }
 0xa66   : > { %v1427_v37 = vsub.f32 %v1423_v34, %v1426_v36  ;;  %v3010_v34 = vld [vmem:[#allocation16 + $0xc0] ss:$16 sps:$4 sm:$0xff]   ;;  %v3018_v36 = vld [vmem:[#allocation16 + $0xe4] ss:$16 sps:$4 sm:$0xff]  }
 0xa68   : > { %v1428_v38 = vmul.f32 1.442695, %v1427_v37  ;;  %v3021_v37 = vld [vmem:[#allocation16 + $0xec] ss:$16 sps:$4 sm:$0xff]  }
 0xa69   : > { %v1437_v39 = vpop.permute.xlu0 %1436 }
 0xa6a   : > { %3068 = vpow2.f32 %v1428_v38  ;;  %v1442_v40 = vsel %vm920_vm1, %v1437_v39, 0  ;;  %v3016_v38 = vld [vmem:[#allocation16 + $0xe0] ss:$16 sps:$4 sm:$0xff]   ;;  %v3019_v39 = vld [vmem:[#allocation16 + $0xe8] ss:$16 sps:$4 sm:$0xff]  }
 0xa6b   : > { %2752 = vmatpush3.bf16.msra.mxu0 %v1442_v40  ;;  %v3022_v40 = vld [vmem:[#allocation19 + $0x40] sm:$0xff]  }
 0xa6c   : > { %1796 = vmatprep.subr.bf16.mxu0 %v2976_v8  ;;  %v3039_v8 = vld [vmem:[#allocation19 + $0xe0] sm:$0xff]  }
 0xa74   : > { %v3069_v41 = vpop.eup %3068 }
 0xa75   : > { %v1430_v42 = vsel %vm904_vm4, %v3069_v41, 0.0 }
 0xa76   : > { %1431 = vadd.xlane.f32.xlu1 %v1430_v42 }
 0xaa1   : > { %v1365_v44 = vpop.f32.mrb[20].mxu0 }
 0xaa2   : > { %v1371_v45 = vadd.f32 %v1365_v44, %v4071_v60  ;;  %v2743_v43 = vpop.f32.mrb[21].mxu0 }
 0xaa3   : > { %v1368_v47 = vpop.f32.mrb[22].mxu0  ;;  %v2513_v43 = vld [vmem:[#allocation13] ss:$0 sm:$0xff] }
 0xaa4   : > { %v2744_v48 = vpop.f32.mrb[23].mxu0 }
 0xaa5   : > { %v2514_v48 = vld [vmem:[#allocation14] ss:$0 sm:$0xff] }
 0xb03   : > { %v1432_v49 = vpop.xlane.xlu1 %1431 }
 0xb04   : > { %3070 = vrcp.f32 %v1432_v49 }
 0xb0e   : > { %v3071_v50 = vpop.eup %3070 }
 0xb0f   : > { %v1434_v51 = vmul.f32 %v3071_v50, %v3069_v41  ;;  %v3023_v41 = vld [vmem:[#allocation19 + $0xc0] sm:$0xff]  }
 0xb11   : > { %v1435_v52 = vpack.c.bf16 %v1434_v51, %v1434_v51  ;;  %v3024_v51 = vld [vmem:[#allocation19] sm:$0xff]  }
 0xb13   : > { %2754 = vmatmul.mubr.msk.bf16.vlgmr.msra.gmra.mrb[24].mxu0 %vm904_vm4, %v1435_v52  ;;  %v3025_v52 = vld [vmem:[#allocation19 + $0x80] sm:$0xff]  }
 0xb14   : > { %1828 = vmatprep.mubr.bf16.mxu0 %v3531_v25  ;;  %1797 = vmatpush1.bf16.msra.mxu0 %v2974_v7  ;;  %v3038_v7 = vld [vmem:[#allocation19 + $0x60] sm:$0xff]  }
 0xb15   : > { %1798 = vmatprep.subr.bf16.mxu0 %v2982_v11  ;;  %v3042_v11 = vld [vmem:[#allocation19 + $0x68] sm:$0xff]  }
 0xbe6   : > { %v1478_v55 = vpop.f32.mrb[24].mxu0 }
 0xbe7   : > { %v1484_v56 = vpack.c.bf16 %v1478_v55, %v1478_v55  ;;  %v2755_v3 = vpop.f32.mrb[25].mxu0  ;;  %v3026_v55 = vld [vmem:[#allocation19 + $0x48] sm:$0xff]  }
 0xbe8   : > { %v1481_v57 = vpop.f32.mrb[26].mxu0  ;;  %v3028_v3 = vld [vmem:[#allocation19 + $0x8] sm:$0xff]  }
 0xbe9   : > { %v2756_v61 = vpop.f32.mrb[27].mxu0  ;;  %2762 = vmatmul.mubr.msk.bf16.vlgmr.msra.gmra.mrb[24].mxu1 %vm855_vm2, %v1484_v56  ;;  %v3027_v56 = vld [vmem:[#allocation19 + $0xc8] sm:$0xff]  }
 0xbea   : > { %1869 = vmatprep.mubr.bf16.mxu1 %v3531_v25  ;;  %v2980_v25 = vld [vmem:[#allocation16 + $0x20] ss:$16 sps:$4 sm:$0xff]   ;;  %1838 = vmatpush1.bf16.msra.mxu1 %v2977_v9  ;;  %v3030_v61 = vld [vmem:[#allocation19 + $0x50] sm:$0xff]   ;;  %v3040_v9 = vld [vmem:[#allocation19 + $0x20] sm:$0xff]  }
 0xbeb   : > { %1839 = vmatprep.subr.bf16.mxu1 %v2985_v12  ;;  %1799 = vmatpush1.bf16.msra.mxu0 %v2980_v25  ;;  %v3029_v57 = vld [vmem:[#allocation19 + $0x88] sm:$0xff]  }
 0xbec   : > { %1800 = vmatprep.subr.bf16.mxu0 %v2988_v14  ;;  %v3043_v12 = vld [vmem:[#allocation19 + $0xe8] sm:$0xff]   ;;  %v3046_v14 = vld [vmem:[#allocation19 + $0x70] sm:$0xff]  }
 0xbed   : > { %v3044_v25 = vld [vmem:[#allocation19 + $0x28] sm:$0xff]  }
 0xbee   : > { %1840 = vmatpush1.bf16.msra.mxu1 %v2983_v13  ;;  %v3045_v13 = vld [vmem:[#allocation19 + $0xa8] sm:$0xff]  }
 0xbef   : > { %1801 = vmatpush1.bf16.msra.mxu0 %v2986_v15  ;;  %v3048_v15 = vld [vmem:[#allocation19 + $0x30] sm:$0xff]  }
 0xbf0   : > { %1802 = vmatprep.subr.bf16.mxu0 %v2994_v20  ;;  %v1618_v20 = vsub.s32 0, %v4026_v58 }
 0xbf3   : > { %1803 = vmatpush1.bf16.msra.mxu0 %v2992_v46  ;;  %v1614_v46 = vld [vmem:[#allocation17] sm:$0xf] }
 0xbf4   : > { %1804 = vmatprep.subr.bf16.mxu0 %v3000_v23  ;;  %v1630_v23 = vsub.s32 3, %v4026_v58 }
 0xbf7   : > { %1805 = vmatpush1.bf16.msra.mxu0 %v2998_v26 }
 0xbf8   : > { %1806 = vmatprep.subr.bf16.mxu0 %v3006_v28  ;;  %v1631_v28 = vrot.slane %v1614_v46, %v1630_v23 }
 0xbfb   : > { %1807 = vmatpush1.bf16.msra.mxu0 %v3004_v30 }
 0xbfc   : > { %1808 = vmatprep.subr.bf16.mxu0 %v3012_v32 }
 0xbff   : > { %1809 = vmatpush1.bf16.msra.mxu0 %v3010_v34 }
 0xc00   : > { %1810 = vmatprep.subr.bf16.mxu0 %v3018_v36 }
 0xc03   : > { %1811 = vmatpush1.bf16.msra.mxu0 %v3016_v38 }
 0xc04   : > { %2621 = vmatprep.subr.bf16.mxu0 %v3022_v40 }
 0xcbc   : > { %v1538_v60 = vpop.f32.mrb[24].mxu1 }
 0xcbd   : > { %v1544_v62 = vadd.f32 %v1538_v60, %v1371_v45  ;;  %v2763_v63 = vpop.f32.mrb[25].mxu1  ;;  %v3031_v60 = vld [vmem:[#allocation19 + $0xd0] sm:$0xff]  }
 0xcbe   : > { %v1541_v1 = vpop.f32.mrb[26].mxu1  ;;  %v3033_v63 = vld [vmem:[#allocation19 + $0x90] sm:$0xff]  }
 0xcbf   : > { %v1545_v4 = vadd.f32 %v1544_v62, %v3980_v0  ;;  %v2764_v5 = vpop.f32.mrb[27].mxu1  ;;  %v2991_v0 = vld [vmem:[#allocation16 + $0x4c] ss:$16 sps:$4 sm:$0xff]   ;;  %v3032_v62 = vld [vmem:[#allocation19 + $0x10] sm:$0xff]  }
 0xcc0   : > { %1841 = vmatprep.subr.bf16.mxu1 %v2991_v0  ;;  %v3034_v1 = vld [vmem:[#allocation19 + $0x58] sm:$0xff]   ;;  %v3047_v0 = vld [vmem:[#allocation19 + $0xf0] sm:$0xff]  }
 0xcc1   : > { %v4114_v6 = vadd.f32 %v2512_v2, %v1545_v4  ;;  %1842 = vmatpush1.bf16.msra.mxu1 %v2989_v16  ;;  %v3035_v2 = vld [vmem:[#allocation19 + $0xd8] sm:$0xff]   ;;  %v3049_v16 = vld [vmem:[#allocation19 + $0xb0] sm:$0xff]  }
 0xcc2   : > { %1843 = vmatprep.subr.bf16.mxu1 %v2997_v21  ;;  %v3036_v4 = vld [vmem:[#allocation19 + $0x18] sm:$0xff]   ;;  %v1626_v21 = vsub.s32 2, %v4026_v58 }
 0xcc3   : > { %1556 = vadd.xlane.f32.xlu1 %v4114_v6  ;;  %v3037_v5 = vld [vmem:[#allocation19 + $0x98] sm:$0xff]  }
 0xcc4   : > { %v1627_v26 = vrot.slane %v1614_v46, %v1626_v21 }
 0xcc5   : > { %1844 = vmatpush1.bf16.msra.mxu1 %v2995_v22  ;;  %v1622_v22 = vsub.s32 1, %v4026_v58 }
 0xcc6   : > { %1845 = vmatprep.subr.bf16.mxu1 %v3003_v24  ;;  %v1619_v24 = vrot.slane %v1614_v46, %v1618_v20 }
 0xcc9   : > { %1846 = vmatpush1.bf16.msra.mxu1 %v3001_v27  ;;  %v1623_v27 = vrot.slane %v1614_v46, %v1622_v22 }
 0xcca   : > { %1847 = vmatprep.subr.bf16.mxu1 %v3009_v29 }
 0xccd   : > { %1848 = vmatpush1.bf16.msra.mxu1 %v3007_v31 }
 0xcce   : > { %1849 = vmatprep.subr.bf16.mxu1 %v3015_v33 }
 0xcd1   : > { %1850 = vmatpush1.bf16.msra.mxu1 %v3013_v35 }
 0xcd2   : > { %1851 = vmatprep.subr.bf16.mxu1 %v3021_v37 }
 0xcd5   : > { %1852 = vmatpush1.bf16.msra.mxu1 %v3019_v39 }
 0xcd6   : > { %2643 = vmatprep.subr.bf16.mxu1 %v3023_v41 }
 0xd50   : > { %v1557_v53 = vpop.xlane.xlu1 %1556 }
 0xd51   : > { %v1558_v17 = vmul.f32 0.0078125, %v1557_v53  ;;  %v3050_v53 = vld [vmem:[#allocation19 + $0x78] sm:$0xff]  }
 0xd53   : > { %v1559_v18 = vsub.f32 %v4114_v6, %v1558_v17  ;;  %v3051_v17 = vld [vmem:[#allocation19 + $0xf8] sm:$0xff]  }
 0xd55   : > { %v1560_v19 = vmul.f32 %v1559_v18, %v1559_v18 }
 0xd57   : > { %1561 = vadd.xlane.f32.xlu1 %v1560_v19  ;;  %v3053_v19 = vld [vmem:[#allocation19 + $0xb8] sm:$0xff]  }
 0xde4   : > { %v1562_v42 = vpop.xlane.xlu1 %1561 }
 0xde5   : > { %v1563_v59 = vmul.f32 0.0078125, %v1562_v42 }
 0xde7   : > { %v1564_v44 = vadd.f32 1e-05, %v1563_v59 }
 0xde9   : > { %3072 = vrsqrt.f32 %v1564_v44 }
 0xdf3   : > { %v3073_v45 = vpop.eup %3072 }
 0xdf4   : > { %v1566_v47 = vmul.f32 %v3073_v45, %v1559_v18  ;;  %v3052_v18 = vld [vmem:[#allocation19 + $0x38] sm:$0xff]  }
 0xdf6   : > { %v1573_v49 = vmul.f32 %v2513_v43, %v1566_v47 }
 0xdf8   : > { %v1580_v50 = vadd.f32 %v2514_v48, %v1573_v49 }
 0xdfa   : > { %v1581_v54 = vpack.c.bf16 %v1580_v50, %v1580_v50 }
 0xdfc   : > { %1829 = vmatmul.mubr.bf16.vlgmr.msra.gmra.mrb[28].mxu0 %v1581_v54  ;;  %1870 = vmatmul.mubr.bf16.vlgmr.msra.gmra.mrb[28].mxu1 %v1581_v54 }
 0xdfd   : > { %2622 = vmatpush3.bf16.msra.mxu0 %v3024_v51  ;;  %2644 = vmatpush3.bf16.msra.mxu1 %v3025_v52 }
 0xdfe   : > { %2623 = vmatprep.subr.bf16.mxu0 %v3026_v55  ;;  %2645 = vmatprep.subr.bf16.mxu1 %v3027_v56 }
 0xe01   : > { %2624 = vmatpush3.bf16.msra.mxu0 %v3028_v3  ;;  %2646 = vmatpush3.bf16.msra.mxu1 %v3029_v57 }
 0xe02   : > { %2625 = vmatprep.subr.bf16.mxu0 %v3030_v61  ;;  %2647 = vmatprep.subr.bf16.mxu1 %v3031_v60 }
 0xe05   : > { %2626 = vmatpush3.bf16.msra.mxu0 %v3032_v62  ;;  %2648 = vmatpush3.bf16.msra.mxu1 %v3033_v63 }
 0xe06   : > { %2627 = vmatprep.subr.bf16.mxu0 %v3034_v1  ;;  %2649 = vmatprep.subr.bf16.mxu1 %v3035_v2 }
 0xe09   : > { %2628 = vmatpush3.bf16.msra.mxu0 %v3036_v4  ;;  %2650 = vmatpush3.bf16.msra.mxu1 %v3037_v5 }
 0xe0a   : > { %2629 = vmatprep.subr.bf16.mxu0 %v3038_v7  ;;  %2651 = vmatprep.subr.bf16.mxu1 %v3039_v8  ;;  %v2547_v7 = vld [vmem:[#allocation20] ss:$0 sm:$0xff] }
 0xe0d   : > { %2630 = vmatpush3.bf16.msra.mxu0 %v3040_v9  ;;  %2652 = vmatpush3.bf16.msra.mxu1 %v3041_v10 }
 0xe0e   : > { %2631 = vmatprep.subr.bf16.mxu0 %v3042_v11  ;;  %2653 = vmatprep.subr.bf16.mxu1 %v3043_v12 }
 0xe11   : > { %2632 = vmatpush3.bf16.msra.mxu0 %v3044_v25  ;;  %2654 = vmatpush3.bf16.msra.mxu1 %v3045_v13 }
 0xe12   : > { %2633 = vmatprep.subr.bf16.mxu0 %v3046_v14  ;;  %2655 = vmatprep.subr.bf16.mxu1 %v3047_v0 }
 0xe15   : > { %2634 = vmatpush3.bf16.msra.mxu0 %v3048_v15  ;;  %2656 = vmatpush3.bf16.msra.mxu1 %v3049_v16 }
 0xe16   : > { %2635 = vmatprep.subr.bf16.mxu0 %v3050_v53  ;;  %2657 = vmatprep.subr.bf16.mxu1 %v3051_v17 }
 0xe19   : > { %2636 = vmatpush3.bf16.msra.mxu0 %v3052_v18  ;;  %2658 = vmatpush3.bf16.msra.mxu1 %v3053_v19 }
 0xecf   : > { %v1830_v29 = vpop.f32.mrb[28].mxu0  ;;  %v1871_v30 = vpop.f32.mrb[28].mxu1 }
 0xed0   : > { %v1831_v31 = vadd.f32 %v1830_v29, %v1619_v24  ;;  %v1872_v32 = vadd.f32 %v1871_v30, %v1627_v26  ;;  %v1832_v33 = vpop.f32.mrb[29].mxu0  ;;  %v1873_v34 = vpop.f32.mrb[29].mxu1 }
 0xed1   : > { %v1833_v35 = vadd.f32 %v1832_v33, %v1623_v27  ;;  %v1874_v36 = vadd.f32 %v1873_v34, %v1631_v28  ;;  %v1834_v37 = vpop.f32.mrb[30].mxu0  ;;  %v1875_v38 = vpop.f32.mrb[30].mxu1 }
 0xed2   : > { %v1882_v39 = vmul.f32 0.70710677, %v1831_v31  ;;  %v1884_v40 = vmul.f32 0.70710677, %v1872_v32  ;;  %v1835_v58 = vpop.f32.mrb[31].mxu0  ;;  %v1876_v59 = vpop.f32.mrb[31].mxu1 }
 0xed3   : > { %v1883_v41 = vmul.f32 0.70710677, %v1833_v35  ;;  %v1885_v42 = vmul.f32 0.70710677, %v1874_v36  ;;  %v1878_v48 = vmul.f32 0.5, %v1831_v31  ;;  %v1880_v51 = vmul.f32 0.5, %v1872_v32 }
 0xed4   : > { %3074 = verf.f32 %v1882_v39  ;;  %v1879_v52 = vmul.f32 0.5, %v1833_v35  ;;  %v1881_v56 = vmul.f32 0.5, %v1874_v36 }
 0xed5   : > { %3076 = verf.f32 %v1884_v40 }
 0xed6   : > { %3078 = verf.f32 %v1883_v41 }
 0xed7   : > { %3080 = verf.f32 %v1885_v42 }
 0xede   : > { %v3075_v44 = vpop.eup %3074 }
 0xedf   : > { %v3077_v45 = vpop.eup %3076  ;;  %v1890_v43 = vadd.f32 1.0, %v3075_v44 }
 0xee0   : > { %v3079_v47 = vpop.eup %3078  ;;  %v1892_v49 = vadd.f32 1.0, %v3077_v45 }
 0xee1   : > { %v3081_v50 = vpop.eup %3080  ;;  %v1891_v54 = vadd.f32 1.0, %v3079_v47  ;;  %v1894_v55 = vmul.f32 %v1890_v43, %v1878_v48 }
 0xee2   : > { %v1893_v3 = vadd.f32 1.0, %v3081_v50  ;;  %v1896_v57 = vmul.f32 %v1892_v49, %v1880_v51 }
 0xee3   : > { %v1895_v61 = vmul.f32 %v1891_v54, %v1879_v52  ;;  %v1898_v63 = vpack.c.bf16 %v1894_v55, %v1894_v55 }
 0xee4   : > { %v1897_v60 = vmul.f32 %v1893_v3, %v1881_v56  ;;  %v1900_v2 = vpack.c.bf16 %v1896_v57, %v1896_v57 }
 0xee5   : > { %v1899_v62 = vpack.c.bf16 %v1895_v61, %v1895_v61 }
 0xee6   : > { %v1901_v1 = vpack.c.bf16 %v1897_v60, %v1897_v60 }
 0xee7   : > { %2197 = vmatprep.mubr.bf16.mxu0 %v1899_v62 }
 0xee8   : > { %2237 = vmatprep.mubr.bf16.mxu1 %v1901_v1  ;;  %2198 = vmatmul.mubr.bf16.vlgmr.msra.gmra.mrb[32].mxu0 %v1898_v63 }
 0xee9   : > { %2238 = vmatmul.mubr.bf16.vlgmr.msra.gmra.mrb[32].mxu1 %v1900_v2 }
 0xfbb   : > { %v2637_v4 = vpop.f32.mrb[32].mxu0 }
 0xfbc   : > { %v2659_v5 = vpop.f32.mrb[32].mxu1  ;;  %v2638_v8 = vpop.f32.mrb[33].mxu0 }
 0xfbd   : > { %v2639_v9 = vadd.f32 %v2638_v8, %v2637_v4  ;;  %v2660_v10 = vpop.f32.mrb[33].mxu1  ;;  %v2640_v11 = vpop.f32.mrb[34].mxu0 }
 0xfbe   : > { %v2661_v12 = vadd.f32 %v2660_v10, %v2659_v5  ;;  %v2662_v25 = vpop.f32.mrb[34].mxu1  ;;  %v2641_v13 = vpop.f32.mrb[35].mxu0 }
 0xfbf   : > { %v2200_v14 = vadd.f32 %v2639_v9, %v2547_v7  ;;  %v2663_v0 = vpop.f32.mrb[35].mxu1 }
 0xfc1   : > { %v2240_v15 = vadd.f32 %v2661_v12, %v2200_v14 }
 0xfc3   : > { %v2245_v16 = vadd.f32 %v2240_v15, %v4114_v6 }
 0xfc5   : > { %2246 = vst [vmem:[%s574_s12] sm:$0xff] %v2245_v16 }
 0xfc6   : > { %3433 = shalt.err (!%p3430_p9)
}
 0xfc7   : > { %s3434_s16 = scalar_lea.hbm %s4129_s25, 128  ;;  %s3438_s29 = scalar_lea.hbm %s4227_s26, 256 }
 0xfc8   : > { %p3435_p7 = scmp.ne.s32.totalorder %s4129_s25, %s3434_s16  ;;  %p3439_p13 = scmp.lt.u32.totalorder %s4129_s25, %s4227_s26 }
 0xfc9   : > { %p3440_p1 = scmp.lt.u32.totalorder %s3438_s29, %s3434_s16  ;;  %p3442_p2 = scmp.lt.u32.totalorder %s3434_s16, %s4129_s25 }
 0xfca   : > { %p3436_p10 = pnand %p3435_p7, %p4228_p0 }
 0xfcb   : > { %p3441_p3 = por %p3440_p1, %p3439_p13 }
 0xfcc   : > { %p3437_p4 = pneg %p3436_p10 }
 0xfcd   : > { %p3443_p6 = por %p3442_p2, %p3441_p3 }
 0xfcf   : > { %p3444_p11 = pnand %p3443_p6, %p3437_p4 }
 0xfd1   : > { %3447 = shalt.err (!%p3444_p11)
}
 0xfd2   : > { %2811 = dma.vmem_to_hbm [thread:$0]  (%p4228_p0), %s4131_s18, 128, %s4129_s25, %s2248_s5  }
 0xfd3 PF: > { %s2273_s19 = sand.u32 1, %s3498_s21   ;;  %p4229_p12 = scmp.ne.s32.totalorder %s4211_s2, 0 }
 0xfd4   : > { %p4230_p8 = scmp.ge.s32.totalorder %s3510_s24, 2  ;;  %s2274_s30 = scalar_lea.sflag [#allocation4], %s2273_s19 }
 0xfd6   : > { %p2852_p5 = pnand %p4230_p8, %p4229_p12 }
 0xfd8   : > { %3493 = dma.done.wait (!%p2852_p5), %s2274_s30, 128  }
 0xfd9   : > { %3495 = vsyncadd (!%p2852_p5), %s2274_s30, 4294967168  ;;  %p31_p9 = scmp.ge.s32.totalorder %s3876_s13, 4   ;;  %s4231_s21 = smov %s3502_s22 }
 0xfda   : > { %s4232_s22 = smov %s3506_s23  ;;  %s4233_s23 = smov %s3888_s20 }
 0xfdb   : > { %s4234_s24 = smov %s3876_s13  ;;  %33 = sbr.rel (!%p31_p9) target bundleno = 17 (0x11), region = 157 }
 0xfe2   :  { %2279 = vsyncpa [#allocation3], 1 }
 0xfe3   :  { %2281 = vsyncpa [#allocation3 + $0x1], 1 }
 0xfe4   :  { %2282 = vsyncpa [#allocation6], 1 }
 0xfe5   :  { %2283 = vsyncpa [#allocation9], 1 }
 0xfe6   :  { %2284 = vsyncpa [#allocation12], 1 }
 0xfe7   :  { %2285 = vsyncpa [#allocation15], 1 }
 0xfe8   :  { %2286 = vsyncpa [#allocation18], 1 }
 0xfe9   :  { %2287 = vsyncpa [#allocation21], 1 }
 0xfea   :  { %2288 = vsyncpa [#allocation4], 1 }
 0xfeb   :  { %2290 = vsyncpa [#allocation4 + $0x1], 1 }

</bundles_post_ra>
